<compile_context>
chip_gen: v7x
topology: tpu7x:2x2x1
jax: 0.10.0
libtpu: 0.0.40
codegen_flags: <defaults>
</compile_context>

<pallas_src>
import functools

import jax
import jax.numpy as jnp
from jax.experimental import pallas as pl
from jax.experimental.pallas import tpu as pltpu


def highway_kernel(x_ref, w_ref, b_ref, o_ref, *, layer_num, dim):
    """x_ref: [TB, D] | w_ref: [L, D, 2D] (cols = [gate | linear]) | b_ref: [L, 1, 2D]."""
    x = x_ref[...].astype(jnp.float32)
    for i in range(layer_num):  # static unroll — layer_num is a compile-time int
        # Single fused matmul for gate + linear projections (one MXU pass, N = 2D).
        # NOTE: for D >~ 512 the contraction should be K-tiled (streamed weight
        # chunks + f32 accumulator) instead of materializing [D, 2D]; fine here.
        y = jnp.dot(x.astype(w_ref.dtype), w_ref[i],
                    preferred_element_type=jnp.float32)
        y = y + b_ref[i].astype(jnp.float32)            # [1, 2D] broadcast
        gate = jax.nn.sigmoid(y[:, :dim])               # EUP
        nonlinear = jnp.maximum(y[:, dim:], 0.0)        # VPU
        x = x + gate * (nonlinear - x)                  # == gate*nl + (1-gate)*x
    o_ref[...] = x.astype(o_ref.dtype)


def _resident_block_spec(shape, index_map, single_buffer):
    """BlockSpec for grid-invariant operands; single-buffer them when supported."""
    if single_buffer and hasattr(pl, "Buffered"):
        try:
            return pl.BlockSpec(shape, index_map,
                                pipeline_mode=pl.Buffered(buffer_count=1))
        except TypeError:
            pass
    return pl.BlockSpec(shape, index_map)


def _compiler_params(vmem_limit_bytes):
    params_cls = getattr(pltpu, "CompilerParams", None) or getattr(
        pltpu, "TPUCompilerParams")
    return params_cls(dimension_semantics=("parallel",),
                      vmem_limit_bytes=int(vmem_limit_bytes))


def _build_call(b_pad, tb, dim, layers, x_dtype, w_dtype, *, single_buffer_weights):
    kernel = functools.partial(highway_kernel, layer_num=layers, dim=dim)
    w_bytes = jnp.dtype(w_dtype).itemsize
    x_bytes = jnp.dtype(x_dtype).itemsize
    wbuf = 1 if single_buffer_weights else 2
    footprint = (
        wbuf * layers * dim * 2 * dim * w_bytes       # fused weights
        + wbuf * layers * 2 * dim * 4                 # fused biases (f32)
        + 2 * 2 * tb * dim * x_bytes                  # x / out, double-buffered
        + tb * 2 * dim * 4 + 4 * tb * dim * 4         # f32 intermediates (rough)
    )
    vmem_limit = min(max(2 * footprint, 32 * 1024 * 1024), 64 * 1024 * 1024)

    return pl.pallas_call(
        kernel,
        out_shape=jax.ShapeDtypeStruct((b_pad, dim), x_dtype),
        grid=(b_pad // tb,),
        in_specs=[
            pl.BlockSpec((tb, dim), lambda i: (i, 0)),
            _resident_block_spec((layers, dim, 2 * dim), lambda i: (0, 0, 0),
                                 single_buffer_weights),
            _resident_block_spec((layers, 1, 2 * dim), lambda i: (0, 0, 0),
                                 single_buffer_weights),
        ],
        out_specs=pl.BlockSpec((tb, dim), lambda i: (i, 0)),
        compiler_params=_compiler_params(vmem_limit),
    )


def highway_forward(x, wl, bl, wg, bg, *, matmul_dtype=jnp.float32, block_batch=None):
    """x: [B, D]; wl/wg: [L, D, D] (stored so y = x @ W + b); bl/bg: [L, 1, D]."""
    B, D = x.shape
    L = wl.shape[0]

    # Fuse gate + linear projections: columns ordered [gate | linear],
    # biases concatenated in the same order.
    w_cat = jnp.concatenate([wg, wl], axis=2).astype(matmul_dtype)  # [L, D, 2D]
    b_cat = jnp.concatenate([bg, bl], axis=2).astype(jnp.float32)   # [L, 1, 2D]

    # Batch tile: multiple of 8 sublanes; >=256 rows fills the v6e/v7x MXU
    # (128-256 is already plenty on v5e).
    if block_batch is None:
        tb = 256 if B >= 256 else -(-B // 8) * 8
    else:
        tb = max(8, -(-block_batch // 8) * 8)
    b_pad = -(-B // tb) * tb
    x_pad = jnp.pad(x, ((0, b_pad - B), (0, 0))) if b_pad != B else x

    try:
        call = _build_call(b_pad, tb, D, L, x.dtype, matmul_dtype,
                           single_buffer_weights=True)
        out = call(x_pad, w_cat, b_cat)
    except Exception:
        # Fallback for jax versions that reject single-buffered pipeline_mode.
        call = _build_call(b_pad, tb, D, L, x.dtype, matmul_dtype,
                           single_buffer_weights=False)
        out = call(x_pad, w_cat, b_cat)
    return out[:B] if b_pad != B else out


def init_params(key, layer_num, dim, dtype=jnp.float32):
    """Deterministic init mimicking nn.Linear's U(-1/sqrt(dim), 1/sqrt(dim))."""
    bound = 1.0 / jnp.sqrt(jnp.float32(dim))
    kwl, kbl, kwg, kbg = jax.random.split(key, 4)
    wl = jax.random.uniform(kwl, (layer_num, dim, dim), dtype, -bound, bound)
    bl = jax.random.uniform(kbl, (layer_num, 1, dim), dtype, -bound, bound)
    wg = jax.random.uniform(kwg, (layer_num, dim, dim), dtype, -bound, bound)
    bg = jax.random.uniform(kbg, (layer_num, 1, dim), dtype, -bound, bound)
    return wl, bl, wg, bg


def highway_reference(x, wl, bl, wg, bg):
    """Pure-JAX reference matching the PyTorch forward semantics."""
    L = wl.shape[0]
    for i in range(L):
        gate = jax.nn.sigmoid(x @ wg[i] + bg[i])
        nonlinear = jax.nn.relu(x @ wl[i] + bl[i])
        x = gate * nonlinear + (1.0 - gate) * x
    return x


if __name__ == "__main__":
    layer_num = 3
    dim = 128          # lane-aligned hidden size
    batch = 80         # not a multiple of the 32-row tile -> exercises grid + padding

    key = jax.random.PRNGKey(0)
    kx, kp = jax.random.split(key)
    x = jax.random.normal(kx, (batch, dim), jnp.float32)
    wl, bl, wg, bg = init_params(kp, layer_num, dim)

    ref = highway_reference(x, wl, bl, wg, bg)

    # f32 matmul path.
    out = highway_forward(x, wl, bl, wg, bg, block_batch=32)
    out = jax.block_until_ready(out)
    assert out.shape == (batch, dim)
    assert jnp.allclose(out, ref, atol=1e-4, rtol=1e-4), "f32 Pallas output mismatch"

    # bf16 matmul path (bf16 weights / operands, f32 MXU accumulation + f32 carry).
    out_bf16 = highway_forward(x, wl, bl, wg, bg,
                               matmul_dtype=jnp.bfloat16, block_batch=32)
    out_bf16 = jax.block_until_ready(out_bf16)
    assert jnp.allclose(out_bf16, ref, atol=5e-2, rtol=5e-2), "bf16 Pallas output mismatch"

    print("KERNEL_OK")
</pallas_src>

<mosaic_0001>
module attributes {stable_mosaic.version = 11 : i64} {
  func.func @highway_kernel(%arg0: i32, %arg1: memref<32x128xf32, #tpu.memory_space<vmem>>, %arg2: memref<3x128x256xf32, #tpu.memory_space<vmem>>, %arg3: memref<3x1x256xf32, #tpu.memory_space<vmem>>, %arg4: memref<32x128xf32, #tpu.memory_space<vmem>>) attributes {dimension_semantics = [#tpu.dimension_semantics<parallel>], iteration_bounds = array<i64: 3>, scalar_prefetch = 0 : i64, scratch_operands = 0 : i64, tpu.core_type = #tpu.core_type<tc>, window_params = [{transform_indices = @transform_0, window_bounds = array<i64: 32, 128>}, {pipeline_mode = #tpu.pipeline_mode<synchronous>, transform_indices = @transform_1, window_bounds = array<i64: 3, 128, 256>}, {pipeline_mode = #tpu.pipeline_mode<synchronous>, transform_indices = @transform_2, window_bounds = array<i64: 3, 1, 256>}, {transform_indices = @transform_3, window_bounds = array<i64: 32, 128>}]} {
    %c0 = arith.constant 0 : index
    %c0_0 = arith.constant 0 : index
    %0 = vector.load %arg1[%c0, %c0_0] : memref<32x128xf32, #tpu.memory_space<vmem>>, vector<32x128xf32>
    %c0_1 = arith.constant 0 : index
    %c0_2 = arith.constant 0 : index
    %c0_3 = arith.constant 0 : index
    %1 = vector.load %arg2[%c0_1, %c0_2, %c0_3] : memref<3x128x256xf32, #tpu.memory_space<vmem>>, vector<1x128x256xf32>
    %2 = vector.shape_cast %1 : vector<1x128x256xf32> to vector<128x256xf32>
    %cst = arith.constant dense<0.000000e+00> : vector<32x256xf32>
    %3 = tpu.matmul %0, %2, %cst {dimension_numbers = #tpu.dot_dimension_numbers<[1], [0], [0], [1], [0, 0, 1, 1], [], []>} : vector<32x128xf32>, vector<128x256xf32>, vector<32x256xf32> -> vector<32x256xf32>
    %c0_4 = arith.constant 0 : index
    %c0_5 = arith.constant 0 : index
    %c0_6 = arith.constant 0 : index
    %4 = vector.load %arg3[%c0_4, %c0_5, %c0_6] : memref<3x1x256xf32, #tpu.memory_space<vmem>>, vector<1x1x256xf32>
    %5 = vector.shape_cast %4 : vector<1x1x256xf32> to vector<1x256xf32>
    %6 = vector.broadcast %5 : vector<1x256xf32> to vector<32x256xf32>
    %7 = arith.addf %3, %6 : vector<32x256xf32>
    %8 = vector.extract_strided_slice %7 {offsets = [0, 0], sizes = [32, 128], strides = [1, 1]} : vector<32x256xf32> to vector<32x128xf32>
    %9 = arith.negf %8 : vector<32x128xf32>
    %10 = math.exp %9 : vector<32x128xf32>
    %cst_7 = arith.constant 1.000000e+00 : f32
    %11 = vector.broadcast %cst_7 : f32 to vector<32x128xf32>
    %12 = arith.addf %11, %10 : vector<32x128xf32>
    %13 = arith.divf %11, %12 : vector<32x128xf32>
    %14 = vector.extract_strided_slice %7 {offsets = [0, 128], sizes = [32, 128], strides = [1, 1]} : vector<32x256xf32> to vector<32x128xf32>
    %cst_8 = arith.constant 0.000000e+00 : f32
    %15 = vector.broadcast %cst_8 : f32 to vector<32x128xf32>
    %16 = arith.maximumf %14, %15 : vector<32x128xf32>
    %17 = arith.subf %16, %0 : vector<32x128xf32>
    %18 = arith.mulf %13, %17 : vector<32x128xf32>
    %19 = arith.addf %0, %18 : vector<32x128xf32>
    %c1 = arith.constant 1 : index
    %c0_9 = arith.constant 0 : index
    %c0_10 = arith.constant 0 : index
    %20 = vector.load %arg2[%c1, %c0_9, %c0_10] : memref<3x128x256xf32, #tpu.memory_space<vmem>>, vector<1x128x256xf32>
    %21 = vector.shape_cast %20 : vector<1x128x256xf32> to vector<128x256xf32>
    %cst_11 = arith.constant dense<0.000000e+00> : vector<32x256xf32>
    %22 = tpu.matmul %19, %21, %cst_11 {dimension_numbers = #tpu.dot_dimension_numbers<[1], [0], [0], [1], [0, 0, 1, 1], [], []>} : vector<32x128xf32>, vector<128x256xf32>, vector<32x256xf32> -> vector<32x256xf32>
    %c1_12 = arith.constant 1 : index
    %c0_13 = arith.constant 0 : index
    %c0_14 = arith.constant 0 : index
    %23 = vector.load %arg3[%c1_12, %c0_13, %c0_14] : memref<3x1x256xf32, #tpu.memory_space<vmem>>, vector<1x1x256xf32>
    %24 = vector.shape_cast %23 : vector<1x1x256xf32> to vector<1x256xf32>
    %25 = vector.broadcast %24 : vector<1x256xf32> to vector<32x256xf32>
    %26 = arith.addf %22, %25 : vector<32x256xf32>
    %27 = vector.extract_strided_slice %26 {offsets = [0, 0], sizes = [32, 128], strides = [1, 1]} : vector<32x256xf32> to vector<32x128xf32>
    %28 = arith.negf %27 : vector<32x128xf32>
    %29 = math.exp %28 : vector<32x128xf32>
    %cst_15 = arith.constant 1.000000e+00 : f32
    %30 = vector.broadcast %cst_15 : f32 to vector<32x128xf32>
    %31 = arith.addf %30, %29 : vector<32x128xf32>
    %32 = arith.divf %30, %31 : vector<32x128xf32>
    %33 = vector.extract_strided_slice %26 {offsets = [0, 128], sizes = [32, 128], strides = [1, 1]} : vector<32x256xf32> to vector<32x128xf32>
    %cst_16 = arith.constant 0.000000e+00 : f32
    %34 = vector.broadcast %cst_16 : f32 to vector<32x128xf32>
    %35 = arith.maximumf %33, %34 : vector<32x128xf32>
    %36 = arith.subf %35, %19 : vector<32x128xf32>
    %37 = arith.mulf %32, %36 : vector<32x128xf32>
    %38 = arith.addf %19, %37 : vector<32x128xf32>
    %c2 = arith.constant 2 : index
    %c0_17 = arith.constant 0 : index
    %c0_18 = arith.constant 0 : index
    %39 = vector.load %arg2[%c2, %c0_17, %c0_18] : memref<3x128x256xf32, #tpu.memory_space<vmem>>, vector<1x128x256xf32>
    %40 = vector.shape_cast %39 : vector<1x128x256xf32> to vector<128x256xf32>
    %cst_19 = arith.constant dense<0.000000e+00> : vector<32x256xf32>
    %41 = tpu.matmul %38, %40, %cst_19 {dimension_numbers = #tpu.dot_dimension_numbers<[1], [0], [0], [1], [0, 0, 1, 1], [], []>} : vector<32x128xf32>, vector<128x256xf32>, vector<32x256xf32> -> vector<32x256xf32>
    %c2_20 = arith.constant 2 : index
    %c0_21 = arith.constant 0 : index
    %c0_22 = arith.constant 0 : index
    %42 = vector.load %arg3[%c2_20, %c0_21, %c0_22] : memref<3x1x256xf32, #tpu.memory_space<vmem>>, vector<1x1x256xf32>
    %43 = vector.shape_cast %42 : vector<1x1x256xf32> to vector<1x256xf32>
    %44 = vector.broadcast %43 : vector<1x256xf32> to vector<32x256xf32>
    %45 = arith.addf %41, %44 : vector<32x256xf32>
    %46 = vector.extract_strided_slice %45 {offsets = [0, 0], sizes = [32, 128], strides = [1, 1]} : vector<32x256xf32> to vector<32x128xf32>
    %47 = arith.negf %46 : vector<32x128xf32>
    %48 = math.exp %47 : vector<32x128xf32>
    %cst_23 = arith.constant 1.000000e+00 : f32
    %49 = vector.broadcast %cst_23 : f32 to vector<32x128xf32>
    %50 = arith.addf %49, %48 : vector<32x128xf32>
    %51 = arith.divf %49, %50 : vector<32x128xf32>
    %52 = vector.extract_strided_slice %45 {offsets = [0, 128], sizes = [32, 128], strides = [1, 1]} : vector<32x256xf32> to vector<32x128xf32>
    %cst_24 = arith.constant 0.000000e+00 : f32
    %53 = vector.broadcast %cst_24 : f32 to vector<32x128xf32>
    %54 = arith.maximumf %52, %53 : vector<32x128xf32>
    %55 = arith.subf %54, %38 : vector<32x128xf32>
    %56 = arith.mulf %51, %55 : vector<32x128xf32>
    %57 = arith.addf %38, %56 : vector<32x128xf32>
    %c0_25 = arith.constant 0 : index
    %c0_26 = arith.constant 0 : index
    %58 = vector.load %arg4[%c0_25, %c0_26] : memref<32x128xf32, #tpu.memory_space<vmem>>, vector<32x128xf32>
    tpu.vector_store %arg4[%c0_25, %c0_26], %57 {strides = array<i32>} : memref<32x128xf32, #tpu.memory_space<vmem>>, vector<32x128xf32>,
    return
  }
  func.func @transform_0(%arg0: i32) -> (i32, i32) {
    %c0_i32 = arith.constant 0 : i32
    %c0_i32_0 = arith.constant 0 : i32
    return %arg0, %c0_i32 : i32, i32
  }
  func.func @transform_1(%arg0: i32) -> (i32, i32, i32) {
    %c0_i32 = arith.constant 0 : i32
    %c0_i32_0 = arith.constant 0 : i32
    %c0_i32_1 = arith.constant 0 : i32
    %c0_i32_2 = arith.constant 0 : i32
    return %c0_i32, %c0_i32_0, %c0_i32_1 : i32, i32, i32
  }
  func.func @transform_2(%arg0: i32) -> (i32, i32, i32) {
    %c0_i32 = arith.constant 0 : i32
    %c0_i32_0 = arith.constant 0 : i32
    %c0_i32_1 = arith.constant 0 : i32
    %c0_i32_2 = arith.constant 0 : i32
    return %c0_i32, %c0_i32_0, %c0_i32_1 : i32, i32, i32
  }
  func.func @transform_3(%arg0: i32) -> (i32, i32) {
    %c0_i32 = arith.constant 0 : i32
    %c0_i32_0 = arith.constant 0 : i32
    return %arg0, %c0_i32 : i32, i32
  }
}

module attributes {stable_mosaic.version = 11 : i64} {
  func.func @highway_kernel(%arg0: i32, %arg1: memref<32x128xf32, #tpu.memory_space<vmem>>, %arg2: memref<3x128x256xf32, #tpu.memory_space<vmem>>, %arg3: memref<3x1x256xf32, #tpu.memory_space<vmem>>, %arg4: memref<32x128xf32, #tpu.memory_space<vmem>>) attributes {dimension_semantics = [#tpu.dimension_semantics<parallel>], iteration_bounds = array<i64: 3>, scalar_prefetch = 0 : i64, scratch_operands = 0 : i64, tpu.core_type = #tpu.core_type<tc>, window_params = [{transform_indices = @transform_0, window_bounds = array<i64: 32, 128>}, {pipeline_mode = #tpu.pipeline_mode<synchronous>, transform_indices = @transform_1, window_bounds = array<i64: 3, 128, 256>}, {pipeline_mode = #tpu.pipeline_mode<synchronous>, transform_indices = @transform_2, window_bounds = array<i64: 3, 1, 256>}, {transform_indices = @transform_3, window_bounds = array<i64: 32, 128>}]} {
    %c0 = arith.constant 0 : index
    %c0_0 = arith.constant 0 : index
    %0 = vector.load %arg1[%c0, %c0_0] : memref<32x128xf32, #tpu.memory_space<vmem>>, vector<32x128xf32>
    %c0_1 = arith.constant 0 : index
    %c0_2 = arith.constant 0 : index
    %c0_3 = arith.constant 0 : index
    %1 = vector.load %arg2[%c0_1, %c0_2, %c0_3] : memref<3x128x256xf32, #tpu.memory_space<vmem>>, vector<1x128x256xf32>
    %2 = vector.shape_cast %1 : vector<1x128x256xf32> to vector<128x256xf32>
    %cst = arith.constant dense<0.000000e+00> : vector<32x256xf32>
    %3 = tpu.matmul %0, %2, %cst {dimension_numbers = #tpu.dot_dimension_numbers<[1], [0], [0], [1], [0, 0, 1, 1], [], []>} : vector<32x128xf32>, vector<128x256xf32>, vector<32x256xf32> -> vector<32x256xf32>
    %c0_4 = arith.constant 0 : index
    %c0_5 = arith.constant 0 : index
    %c0_6 = arith.constant 0 : index
    %4 = vector.load %arg3[%c0_4, %c0_5, %c0_6] : memref<3x1x256xf32, #tpu.memory_space<vmem>>, vector<1x1x256xf32>
    %5 = vector.shape_cast %4 : vector<1x1x256xf32> to vector<1x256xf32>
    %6 = vector.broadcast %5 : vector<1x256xf32> to vector<32x256xf32>
    %7 = arith.addf %3, %6 : vector<32x256xf32>
    %8 = vector.extract_strided_slice %7 {offsets = [0, 0], sizes = [32, 128], strides = [1, 1]} : vector<32x256xf32> to vector<32x128xf32>
    %9 = arith.negf %8 : vector<32x128xf32>
    %10 = math.exp %9 : vector<32x128xf32>
    %cst_7 = arith.constant 1.000000e+00 : f32
    %11 = vector.broadcast %cst_7 : f32 to vector<32x128xf32>
    %12 = arith.addf %11, %10 : vector<32x128xf32>
    %13 = arith.divf %11, %12 : vector<32x128xf32>
    %14 = vector.extract_strided_slice %7 {offsets = [0, 128], sizes = [32, 128], strides = [1, 1]} : vector<32x256xf32> to vector<32x128xf32>
    %cst_8 = arith.constant 0.000000e+00 : f32
    %15 = vector.broadcast %cst_8 : f32 to vector<32x128xf32>
    %16 = arith.maximumf %14, %15 : vector<32x128xf32>
    %17 = arith.subf %16, %0 : vector<32x128xf32>
    %18 = arith.mulf %13, %17 : vector<32x128xf32>
    %19 = arith.addf %0, %18 : vector<32x128xf32>
    %c1 = arith.constant 1 : index
    %c0_9 = arith.constant 0 : index
    %c0_10 = arith.constant 0 : index
    %20 = vector.load %arg2[%c1, %c0_9, %c0_10] : memref<3x128x256xf32, #tpu.memory_space<vmem>>, vector<1x128x256xf32>
    %21 = vector.shape_cast %20 : vector<1x128x256xf32> to vector<128x256xf32>
    %cst_11 = arith.constant dense<0.000000e+00> : vector<32x256xf32>
    %22 = tpu.matmul %19, %21, %cst_11 {dimension_numbers = #tpu.dot_dimension_numbers<[1], [0], [0], [1], [0, 0, 1, 1], [], []>} : vector<32x128xf32>, vector<128x256xf32>, vector<32x256xf32> -> vector<32x256xf32>
    %c1_12 = arith.constant 1 : index
    %c0_13 = arith.constant 0 : index
    %c0_14 = arith.constant 0 : index
    %23 = vector.load %arg3[%c1_12, %c0_13, %c0_14] : memref<3x1x256xf32, #tpu.memory_space<vmem>>, vector<1x1x256xf32>
    %24 = vector.shape_cast %23 : vector<1x1x256xf32> to vector<1x256xf32>
    %25 = vector.broadcast %24 : vector<1x256xf32> to vector<32x256xf32>
    %26 = arith.addf %22, %25 : vector<32x256xf32>
    %27 = vector.extract_strided_slice %26 {offsets = [0, 0], sizes = [32, 128], strides = [1, 1]} : vector<32x256xf32> to vector<32x128xf32>
    %28 = arith.negf %27 : vector<32x128xf32>
    %29 = math.exp %28 : vector<32x128xf32>
    %cst_15 = arith.constant 1.000000e+00 : f32
    %30 = vector.broadcast %cst_15 : f32 to vector<32x128xf32>
    %31 = arith.addf %30, %29 : vector<32x128xf32>
    %32 = arith.divf %30, %31 : vector<32x128xf32>
    %33 = vector.extract_strided_slice %26 {offsets = [0, 128], sizes = [32, 128], strides = [1, 1]} : vector<32x256xf32> to vector<32x128xf32>
    %cst_16 = arith.constant 0.000000e+00 : f32
    %34 = vector.broadcast %cst_16 : f32 to vector<32x128xf32>
    %35 = arith.maximumf %33, %34 : vector<32x128xf32>
    %36 = arith.subf %35, %19 : vector<32x128xf32>
    %37 = arith.mulf %32, %36 : vector<32x128xf32>
    %38 = arith.addf %19, %37 : vector<32x128xf32>
    %c2 = arith.constant 2 : index
    %c0_17 = arith.constant 0 : index
    %c0_18 = arith.constant 0 : index
    %39 = vector.load %arg2[%c2, %c0_17, %c0_18] : memref<3x128x256xf32, #tpu.memory_space<vmem>>, vector<1x128x256xf32>
    %40 = vector.shape_cast %39 : vector<1x128x256xf32> to vector<128x256xf32>
    %cst_19 = arith.constant dense<0.000000e+00> : vector<32x256xf32>
    %41 = tpu.matmul %38, %40, %cst_19 {dimension_numbers = #tpu.dot_dimension_numbers<[1], [0], [0], [1], [0, 0, 1, 1], [], []>} : vector<32x128xf32>, vector<128x256xf32>, vector<32x256xf32> -> vector<32x256xf32>
    %c2_20 = arith.constant 2 : index
    %c0_21 = arith.constant 0 : index
    %c0_22 = arith.constant 0 : index
    %42 = vector.load %arg3[%c2_20, %c0_21, %c0_22] : memref<3x1x256xf32, #tpu.memory_space<vmem>>, vector<1x1x256xf32>
    %43 = vector.shape_cast %42 : vector<1x1x256xf32> to vector<1x256xf32>
    %44 = vector.broadcast %43 : vector<1x256xf32> to vector<32x256xf32>
    %45 = arith.addf %41, %44 : vector<32x256xf32>
    %46 = vector.extract_strided_slice %45 {offsets = [0, 0], sizes = [32, 128], strides = [1, 1]} : vector<32x256xf32> to vector<32x128xf32>
    %47 = arith.negf %46 : vector<32x128xf32>
    %48 = math.exp %47 : vector<32x128xf32>
    %cst_23 = arith.constant 1.000000e+00 : f32
    %49 = vector.broadcast %cst_23 : f32 to vector<32x128xf32>
    %50 = arith.addf %49, %48 : vector<32x128xf32>
    %51 = arith.divf %49, %50 : vector<32x128xf32>
    %52 = vector.extract_strided_slice %45 {offsets = [0, 128], sizes = [32, 128], strides = [1, 1]} : vector<32x256xf32> to vector<32x128xf32>
    %cst_24 = arith.constant 0.000000e+00 : f32
    %53 = vector.broadcast %cst_24 : f32 to vector<32x128xf32>
    %54 = arith.maximumf %52, %53 : vector<32x128xf32>
    %55 = arith.subf %54, %38 : vector<32x128xf32>
    %56 = arith.mulf %51, %55 : vector<32x128xf32>
    %57 = arith.addf %38, %56 : vector<32x128xf32>
    %c0_25 = arith.constant 0 : index
    %c0_26 = arith.constant 0 : index
    %58 = vector.load %arg4[%c0_25, %c0_26] : memref<32x128xf32, #tpu.memory_space<vmem>>, vector<32x128xf32>
    tpu.vector_store %arg4[%c0_25, %c0_26], %57 {strides = array<i32>} : memref<32x128xf32, #tpu.memory_space<vmem>>, vector<32x128xf32>,
    return
  }
  func.func @transform_0(%arg0: i32) -> (i32, i32) {
    %c0_i32 = arith.constant 0 : i32
    %c0_i32_0 = arith.constant 0 : i32
    return %arg0, %c0_i32 : i32, i32
  }
  func.func @transform_1(%arg0: i32) -> (i32, i32, i32) {
    %c0_i32 = arith.constant 0 : i32
    %c0_i32_0 = arith.constant 0 : i32
    %c0_i32_1 = arith.constant 0 : i32
    %c0_i32_2 = arith.constant 0 : i32
    return %c0_i32, %c0_i32_0, %c0_i32_1 : i32, i32, i32
  }
  func.func @transform_2(%arg0: i32) -> (i32, i32, i32) {
    %c0_i32 = arith.constant 0 : i32
    %c0_i32_0 = arith.constant 0 : i32
    %c0_i32_1 = arith.constant 0 : i32
    %c0_i32_2 = arith.constant 0 : i32
    return %c0_i32, %c0_i32_0, %c0_i32_1 : i32, i32, i32
  }
  func.func @transform_3(%arg0: i32) -> (i32, i32) {
    %c0_i32 = arith.constant 0 : i32
    %c0_i32_0 = arith.constant 0 : i32
    return %arg0, %c0_i32 : i32, i32
  }
}

</mosaic_0001>

<bundles_post_ra>
// kernel: tpu_custom_call.1
= control target key start
LH: loop header
LB: loop body
LE: loop exit
PB: predicated region body
PF: predicated region fallthrough
CT: control target
= control target key end

     0   :  { %8 = vsyncpa [#allocation3], 0  ;;  %s1543_s0 = inlined_call_operand.hbm [shape: f32[96,128], index: 0, kind: input, shape index: {}]   ;;  %s1544_s1 = inlined_call_operand.hbm [shape: f32[3,128,256], index: 1, kind: input, shape index: {}]   ;;  %s1545_s2 = inlined_call_operand.vmem [shape: f32[3,1,256], index: 2, kind: input, shape index: {}]   ;;  %s1546_s3 = inlined_call_operand.hbm [shape: f32[96,128], index: 3, kind: output, shape index: {}]  }
   0x1   :  { %10 = vsyncpa [#allocation3 + $0x1], 0 }
   0x2   :  { %11 = vsyncpa [#allocation6], 0 }
   0x3   :  { %12 = vsyncpa [#allocation4], 0 }
   0x4   :  { %14 = vsyncpa [#allocation4 + $0x1], 0  ;;  %s1250_s12 = smov 0   ;;  %s1252_s13 = smov 0  }
   0x5   :  { %s1254_s14 = smov 0   ;;  %s1256_s15 = smov 0  }
   0x6 LB: > { %s1271_s16 = sadd.s32 4294967295, %s1218_s15   ;;  %s834_s17 = sadd.s32 4294967294, %s1218_s15   ;;  %s1218_s15 = sphi %s1256_s15, %s1565_s15   ;;  %s1214_s14 = sphi %s1254_s14, %s1564_s14   ;;  %s1210_s13 = sphi %s1252_s13, %s1563_s13   ;;  %s1206_s12 = sphi %s1250_s12, %s1562_s12  }
   0x7   : > { %p40_p0 = scmp.ne.s32.totalorder %s1210_s13, %s1206_s12  ;;  %p1547_p1 = scmp.eq.s32.totalorder %s1271_s16, 0 }
   0x8   : > { %p112_p3 = scmp.eq.s32.totalorder %s834_s17, 2  ;;  %p835_p5 = scmp.ge.s32.totalorder %s1218_s15, 1 }
   0x9   : > { %p1280_p4 = por %p1547_p1, %p40_p0  ;;  %p119_p7 = scmp.lt.s32.totalorder %s1218_s15, 4 }
   0xa   : > { %p1285_p6 = por %p112_p3, %p40_p0  ;;  %s1220_s21 = smov [#allocation5]  }
   0xb   : > { %s1550_s18 = scalar_select %p1280_p4, 1, 0 }
   0xc   : > { %s1551_s19 = scalar_select %p1285_p6, 1, 0 }
   0xd   : > { %p1290_p8 = pnand %p835_p5, %p119_p7  ;;  %s131_s22 = sshll.u32 %s1220_s21, 4  ;;  %s132_s22 = int_to_ptr.vmem [resolvable:$true] %s131_s22 }
   0xe   : > { %s1303_s24 = sadd.s32 1, %s1218_s15   ;;  %s27_s25 = sadd.s32 1, %s1214_s14 }
   0xf   : > { %s1552_s20 = scalar_select %p1290_p8, 1, 0 }
  0x10   : > { %p986_p9 = pneg %p1290_p8  ;;  %s24_s26 = ssub.s32 %s1218_s15, %s1303_s24 }
  0x11   : > { %s1090_s29 = scalar_lea.hbm %s1544_s1, 12288 }
  0x12   : > { %p1298_p10 = pnand %p986_p9, %p1547_p1  ;;  %p1091_p11 = scmp.ne.s32.totalorder %s1544_s1, %s1090_s29 }
  0x13   : > { %p1097_p3 = scmp.lt.u32.totalorder %s1090_s29, %s1544_s1 }
  0x14   : > { %p1092_p12 = pneg %p1298_p10 }
  0x16   : > { %p1093_p13 = pnand %p1092_p12, %p1091_p11 }
  0x18   : > { %p1094_p0 = pneg %p1093_p13 }
  0x1a   : > { %p1099_p5 = pnand %p1097_p3, %p1094_p0 }
  0x1c   : > { %1102 = shalt.err (!%p1099_p5)
}
  0x1d   : > { %s1103_s7 = scalar_lea.vmem %s132_s22, 12288  ;;  %p1111_p2 = scmp.lt.s32.totalorder %s132_s22, %s132_s22 }
  0x1e   : > { %p1104_p7 = scmp.ne.s32.totalorder %s132_s22, %s1103_s7  ;;  %p1112_p6 = scmp.lt.s32.totalorder %s1103_s7, %s1103_s7 }
  0x20   : > { %p1106_p9 = pnand %p1104_p7, %p1092_p12  ;;  %p1113_p4 = por %p1112_p6, %p1111_p2 }
  0x22   : > { %p1107_p1 = pneg %p1106_p9 }
  0x24   : > { %p1114_p8 = pnand %p1113_p4, %p1107_p1 }
  0x26   : > { %1117 = shalt.err (!%p1114_p8)
}
  0x27   : > { %s1221_s8 = smov 256   ;;  %s1222_s9 = smov 16  }
  0x28   : > { %989 = dma.hbm_to_vmem [thread:$0]  (!%p1298_p10), %s1544_s1, 12288, %s132_s22, [#allocation6], %s1221_s8, %s1221_s8, %s1222_s9  }
  0x29   : > { %p25_p11 = scmp.eq.s32.totalorder %s24_s26, 0  ;;  %p34_p2 = scmp.ne.s32.totalorder %s1214_s14, %s1210_s13 }
  0x2a   : > { %p35_p1 = scmp.eq.s32.totalorder %s1218_s15, 0  ;;  %p999_p4 = scmp.lt.s32.totalorder %s1218_s15, 3 }
  0x2b   : > { %s1329_s17 = scalar_select %p25_p11, %s1214_s14, %s27_s25  }
  0x2c   : > { %p36_p6 = por %p35_p1, %p34_p2  ;;  %p1554_p8 = scmp.eq.s32.totalorder %s1271_s16, 2 }
  0x2d   : > { %s148_s27 = sand.u32 1, %s1214_s14   ;;  %s864_s28 = sshll.u32 %s1218_s15, 9 }
  0x2e   : > { %p1333_p12 = por %p1554_p8, %p34_p2  ;;  %s838_s29 = sshll.u32 %s148_s27, 5 }
  0x2f   : > { %s1342_s4 = scalar_lea.hbm %s1543_s0, %s864_s28  ;;  %s152_s22 = scalar_lea.vmem [#allocation2], %s838_s29 }
  0x30   : > { %s159_s25 = sshll.u32 %s152_s22, 4  ;;  %p1344_p10 = pnand %p999_p4, %p36_p6  ;;  %s1348_s25 = int_to_ptr.vmem [resolvable:$true] %s159_s25 }
  0x31   : > { %s1350_s5 = scalar_lea.sflag [#allocation3], %s148_s27  ;;  %s1118_s6 = scalar_lea.hbm %s1342_s4, 512 }
  0x32   : > { %p1119_p13 = scmp.ne.s32.totalorder %s1342_s4, %s1118_s6  ;;  %p1120_p0 = pneg %p1344_p10 }
  0x33   : > { %s1123_s9 = scalar_lea.hbm %s1543_s0, 1536  ;;  %p1124_p7 = scmp.lt.u32.totalorder %s1342_s4, %s1543_s0 }
  0x34   : > { %p1121_p3 = pnand %p1120_p0, %p1119_p13  ;;  %p1125_p9 = scmp.lt.u32.totalorder %s1123_s9, %s1118_s6 }
  0x35   : > { %p1127_p2 = scmp.lt.u32.totalorder %s1118_s6, %s1342_s4 }
  0x36   : > { %p1122_p5 = pneg %p1121_p3  ;;  %p1126_p11 = por %p1125_p9, %p1124_p7 }
  0x38   : > { %p1128_p1 = por %p1127_p2, %p1126_p11 }
  0x3a   : > { %p1129_p4 = pnand %p1128_p1, %p1122_p5 }
  0x3c   : > { %1132 = shalt.err (!%p1129_p4)
}
  0x3d   : > { %s1133_s27 = scalar_lea.vmem %s1348_s25, 512  ;;  %s1223_s28 = smov [#allocation2]  }
  0x3e   : > { %p1134_p6 = scmp.ne.s32.totalorder %s1348_s25, %s1133_s27  ;;  %s1138_s29 = sshll.u32 %s1223_s28, 4  ;;  %s1139_s29 = int_to_ptr.vmem [resolvable:$false] %s1138_s29 }
  0x3f   : > { %s1140_s23 = scalar_lea.vmem %s1139_s29, 1024  ;;  %p1141_p3 = scmp.lt.s32.totalorder %s1348_s25, %s1139_s29 }
  0x40   : > { %p1136_p8 = pnand %p1134_p6, %p1120_p0  ;;  %p1142_p7 = scmp.lt.s32.totalorder %s1140_s23, %s1133_s27 }
  0x42   : > { %p1137_p13 = pneg %p1136_p8  ;;  %p1143_p9 = por %p1142_p7, %p1141_p3 }
  0x44   : > { %p1144_p11 = pnand %p1143_p9, %p1137_p13 }
  0x46   : > { %1147 = shalt.err (!%p1144_p11)
}
  0x47   : > { %s1224_s30 = smov 128   ;;  %s1225_s22 = smov 8  }
  0x48   : > { %993 = dma.hbm_to_vmem [thread:$0]  (!%p1344_p10), %s1342_s4, 512, %s1348_s25, %s1350_s5, %s1224_s30, %s1224_s30, %s1225_s22  }
  0x49   : > { %p1557_p0 = scmp.ne.s32.totalorder %s1552_s20, 0 }
  0x4a   : > { %s1381_s6 = sand.u32 (!%p1557_p0), 1, %s1210_s13   ;;  %p1558_p5 = scmp.ne.s32.totalorder (!%p1557_p0), %s1550_s18, 0 }
  0x4b   : > { %171 = sbr.rel (%p1557_p0) target bundleno = 880 (0x370), region = 32  ;;  %s842_s7 = sshll.u32 (!%p1557_p0), %s1381_s6, 5 }
  0x4c   : > { %s174_s8 = scalar_lea.sflag (!%p1557_p0), [#allocation3], %s1381_s6  ;;  %s1387_s9 = scalar_lea.vmem (!%p1557_p0), [#allocation2], %s842_s7 }
  0x52   : > { %1193 = dma.done.wait (%p1558_p5), %s174_s8, 512  }
  0x53   : > { %1195 = vsyncadd (%p1558_p5), %s174_s8, 4294966784  ;;  %p1559_p10 = scmp.eq.s32.totalorder %s1271_s16, 0 }
  0x55   : > { %1197 = dma.done.wait (%p1559_p10), [#allocation6], 12288   ;;  %p1560_p2 = pmov %p1559_p10 }
  0x56   : > { %v1226_v0 = vmov 0.0   ;;  %v211_v1 = vld [vmem:[#allocation5 + $0x8] sm:$0xff]  ;;  %v213_v2 = vld [vmem:[#allocation5 + $0x18] sm:$0xff]  ;;  %v210_v3 = vld [vmem:[#allocation5] sm:$0xff]  ;;  %s203_s10 = scalar_lea.vmem [#allocation7], %s842_s7  ;;  %s865_s27 = sshll.u32 %s1271_s16, 9 }
  0x57   : > { %1199 = vsyncadd (%p1560_p2), [#allocation6], 4294955008  ;;  %318 = vmatprep.mubr.f32.mxu0 %v1226_v0  ;;  %493 = vmatprep.mubr.f32.mxu1 %v1226_v0  ;;  %v866_v4 = vpack.c.bf16 %v213_v2, %v211_v1  ;;  %v212_v5 = vld [vmem:[#allocation5 + $0x10] sm:$0xff]  ;;  %v215_v6 = vld [vmem:[#allocation5 + $0x28] sm:$0xff]  ;;  %s751_s11 = sshll.u32 %s203_s10, 4  ;;  %s1499_s23 = scalar_lea.hbm %s1546_s3, %s865_s27  ;;  %s1494_s11 = int_to_ptr.vmem [resolvable:$true] %s751_s11 }
  0x58   : > { %v217_v7 = vld [vmem:[#allocation5 + $0x38] sm:$0xff]  ;;  %v868_v8 = vpack.c.bf16 %v212_v5, %v210_v3  ;;  %v214_v10 = vld [vmem:[#allocation5 + $0x20] sm:$0xff]  ;;  %v216_v11 = vld [vmem:[#allocation5 + $0x30] sm:$0xff]  ;;  %s738_s30 = scalar_lea.sflag [#allocation4], %s1381_s6  ;;  %s1148_s22 = scalar_lea.vmem %s1494_s11, 512 }
  0x59   : > { %v870_v9 = vpack.c.bf16 %v217_v7, %v215_v6  ;;  %v219_v12 = vld [vmem:[#allocation5 + $0x48] sm:$0xff]  ;;  %867 = vmatprep.subr.bf16.mxu0 %v866_v4  ;;  %v221_v13 = vld [vmem:[#allocation5 + $0x58] sm:$0xff]  ;;  %v872_v14 = vpack.c.bf16 %v216_v11, %v214_v10  ;;  %v218_v16 = vld [vmem:[#allocation5 + $0x40] sm:$0xff]  ;;  %p1149_p1 = scmp.ne.s32.totalorder %s1494_s11, %s1148_s22  ;;  %s1227_s16 = smov [#allocation7]  }
  0x5a   : > { %869 = vmatpush1.bf16.msra.mxu0 %v868_v8  ;;  %v874_v15 = vpack.c.bf16 %v221_v13, %v219_v12  ;;  %v220_v17 = vld [vmem:[#allocation5 + $0x50] sm:$0xff]  ;;  %v223_v18 = vld [vmem:[#allocation5 + $0x68] sm:$0xff]  ;;  %v225_v19 = vld [vmem:[#allocation5 + $0x78] sm:$0xff]  ;;  %s1152_s7 = sshll.u32 %s1227_s16, 4  ;;  %s1153_s7 = int_to_ptr.vmem [resolvable:$false] %s1152_s7 }
  0x5b   : > { %871 = vmatprep.subr.bf16.mxu0 %v870_v9  ;;  %v876_v20 = vpack.c.bf16 %v220_v17, %v218_v16  ;;  %v878_v21 = vpack.c.bf16 %v225_v19, %v223_v18  ;;  %v222_v22 = vld [vmem:[#allocation5 + $0x60] sm:$0xff]  ;;  %v224_v23 = vld [vmem:[#allocation5 + $0x70] sm:$0xff]  ;;  %v227_v24 = vld [vmem:[#allocation5 + $0x88] sm:$0xff]  ;;  %p1150_p4 = pnand %p1149_p1, %p1333_p12  ;;  %s1154_s8 = scalar_lea.vmem %s1153_s7, 1024 }
  0x5c   : > { %v229_v25 = vld [vmem:[#allocation5 + $0x98] sm:$0xff]  ;;  %v880_v26 = vpack.c.bf16 %v224_v23, %v222_v22  ;;  %v226_v28 = vld [vmem:[#allocation5 + $0x80] sm:$0xff]  ;;  %v228_v29 = vld [vmem:[#allocation5 + $0x90] sm:$0xff]  ;;  %p1155_p8 = scmp.lt.s32.totalorder %s1494_s11, %s1153_s7  ;;  %p1156_p13 = scmp.lt.s32.totalorder %s1154_s8, %s1148_s22 }
  0x5d   : > { %v882_v27 = vpack.c.bf16 %v229_v25, %v227_v24  ;;  %v231_v30 = vld [vmem:[#allocation5 + $0xa8] sm:$0xff]  ;;  %v233_v31 = vld [vmem:[#allocation5 + $0xb8] sm:$0xff]  ;;  %v884_v32 = vpack.c.bf16 %v228_v29, %v226_v28  ;;  %v230_v34 = vld [vmem:[#allocation5 + $0xa0] sm:$0xff]  ;;  %p1151_p6 = pneg %p1150_p4 }
  0x5e   : > { %873 = vmatpush1.bf16.msra.mxu0 %v872_v14  ;;  %v886_v33 = vpack.c.bf16 %v233_v31, %v231_v30  ;;  %v232_v35 = vld [vmem:[#allocation5 + $0xb0] sm:$0xff]  ;;  %v235_v36 = vld [vmem:[#allocation5 + $0xc8] sm:$0xff]  ;;  %v237_v37 = vld [vmem:[#allocation5 + $0xd8] sm:$0xff]  ;;  %p1157_p3 = por %p1156_p13, %p1155_p8 }
  0x5f   : > { %875 = vmatprep.subr.bf16.mxu0 %v874_v15  ;;  %v888_v38 = vpack.c.bf16 %v232_v35, %v230_v34  ;;  %v890_v39 = vpack.c.bf16 %v237_v37, %v235_v36  ;;  %v234_v40 = vld [vmem:[#allocation5 + $0xc0] sm:$0xff]  ;;  %v236_v41 = vld [vmem:[#allocation5 + $0xd0] sm:$0xff]  ;;  %v239_v42 = vld [vmem:[#allocation5 + $0xe8] sm:$0xff] }
  0x60   : > { %v241_v43 = vld [vmem:[#allocation5 + $0xf8] sm:$0xff]  ;;  %v892_v44 = vpack.c.bf16 %v236_v41, %v234_v40  ;;  %v238_v46 = vld [vmem:[#allocation5 + $0xe0] sm:$0xff]  ;;  %v240_v47 = vld [vmem:[#allocation5 + $0xf0] sm:$0xff]  ;;  %p1158_p7 = pnand %p1157_p3, %p1151_p6 }
  0x61   : > { %v894_v45 = vpack.c.bf16 %v241_v43, %v239_v42  ;;  %v896_v48 = vpack.c.bf16 %v240_v47, %v238_v46  ;;  %v1400_v49 = vld [vmem:[%s1387_s9] sm:$0xff]  ;;  %v1405_v50 = vld [vmem:[%s1387_s9 + $0x8] sm:$0xff]  ;;  %v1410_v51 = vld [vmem:[%s1387_s9 + $0x10] sm:$0xff] }
  0x62   : > { %877 = vmatpush1.bf16.msra.mxu0 %v876_v20  ;;  %v1415_v52 = vld [vmem:[%s1387_s9 + $0x18] sm:$0xff]  ;;  %v385_v53 = vld [vmem:[#allocation5 + $0x108] sm:$0xff]  ;;  %v384_v56 = vld [vmem:[#allocation5 + $0x100] sm:$0xff] }
  0x63   : > { %879 = vmatprep.subr.bf16.mxu0 %v878_v21  ;;  %v387_v54 = vld [vmem:[#allocation5 + $0x118] sm:$0xff]  ;;  %v386_v57 = vld [vmem:[#allocation5 + $0x110] sm:$0xff]  ;;  %v389_v59 = vld [vmem:[#allocation5 + $0x128] sm:$0xff] }
  0x64   : > { %v898_v55 = vpack.c.bf16 %v387_v54, %v385_v53  ;;  %v900_v58 = vpack.c.bf16 %v386_v57, %v384_v56  ;;  %v391_v60 = vld [vmem:[#allocation5 + $0x138] sm:$0xff]  ;;  %v388_v62 = vld [vmem:[#allocation5 + $0x120] sm:$0xff]  ;;  %v390_v63 = vld [vmem:[#allocation5 + $0x130] sm:$0xff] }
  0x65   : > { %v902_v61 = vpack.c.bf16 %v391_v60, %v389_v59  ;;  %v904_v1 = vpack.c.bf16 %v390_v63, %v388_v62  ;;  %v393_v2 = vld [vmem:[#allocation5 + $0x148] sm:$0xff]  ;;  %v395_v3 = vld [vmem:[#allocation5 + $0x158] sm:$0xff]  ;;  %v392_v5 = vld [vmem:[#allocation5 + $0x140] sm:$0xff] }
  0x66   : > { %881 = vmatpush1.bf16.msra.mxu0 %v880_v26  ;;  %899 = vmatprep.subr.bf16.mxu1 %v898_v55  ;;  %v906_v4 = vpack.c.bf16 %v395_v3, %v393_v2  ;;  %v394_v6 = vld [vmem:[#allocation5 + $0x150] sm:$0xff]  ;;  %v397_v8 = vld [vmem:[#allocation5 + $0x168] sm:$0xff]  ;;  %v399_v9 = vld [vmem:[#allocation5 + $0x178] sm:$0xff] }
  0x67   : > { %883 = vmatprep.subr.bf16.mxu0 %v882_v27  ;;  %901 = vmatpush1.bf16.msra.mxu1 %v900_v58  ;;  %v908_v7 = vpack.c.bf16 %v394_v6, %v392_v5  ;;  %v910_v10 = vpack.c.bf16 %v399_v9, %v397_v8  ;;  %v396_v11 = vld [vmem:[#allocation5 + $0x160] sm:$0xff]  ;;  %v398_v12 = vld [vmem:[#allocation5 + $0x170] sm:$0xff]  ;;  %v401_v14 = vld [vmem:[#allocation5 + $0x188] sm:$0xff] }
  0x68   : > { %903 = vmatprep.subr.bf16.mxu1 %v902_v61  ;;  %v912_v13 = vpack.c.bf16 %v398_v12, %v396_v11  ;;  %v403_v15 = vld [vmem:[#allocation5 + $0x198] sm:$0xff]  ;;  %v400_v17 = vld [vmem:[#allocation5 + $0x180] sm:$0xff]  ;;  %v402_v18 = vld [vmem:[#allocation5 + $0x190] sm:$0xff] }
  0x69   : > { %v914_v16 = vpack.c.bf16 %v403_v15, %v401_v14  ;;  %v916_v19 = vpack.c.bf16 %v402_v18, %v400_v17  ;;  %v405_v20 = vld [vmem:[#allocation5 + $0x1a8] sm:$0xff]  ;;  %v407_v21 = vld [vmem:[#allocation5 + $0x1b8] sm:$0xff]  ;;  %v404_v23 = vld [vmem:[#allocation5 + $0x1a0] sm:$0xff] }
  0x6a   : > { %885 = vmatpush1.bf16.msra.mxu0 %v884_v32  ;;  %v918_v22 = vpack.c.bf16 %v407_v21, %v405_v20  ;;  %v406_v24 = vld [vmem:[#allocation5 + $0x1b0] sm:$0xff]  ;;  %v409_v26 = vld [vmem:[#allocation5 + $0x1c8] sm:$0xff]  ;;  %v411_v27 = vld [vmem:[#allocation5 + $0x1d8] sm:$0xff] }
  0x6b   : > { %887 = vmatprep.subr.bf16.mxu0 %v886_v33  ;;  %905 = vmatpush1.bf16.msra.mxu1 %v904_v1  ;;  %v920_v25 = vpack.c.bf16 %v406_v24, %v404_v23  ;;  %v922_v28 = vpack.c.bf16 %v411_v27, %v409_v26  ;;  %v408_v29 = vld [vmem:[#allocation5 + $0x1c0] sm:$0xff]  ;;  %v410_v30 = vld [vmem:[#allocation5 + $0x1d0] sm:$0xff]  ;;  %v413_v32 = vld [vmem:[#allocation5 + $0x1e8] sm:$0xff] }
  0x6c   : > { %907 = vmatprep.subr.bf16.mxu1 %v906_v4  ;;  %v924_v31 = vpack.c.bf16 %v410_v30, %v408_v29  ;;  %v415_v33 = vld [vmem:[#allocation5 + $0x1f8] sm:$0xff]  ;;  %v412_v35 = vld [vmem:[#allocation5 + $0x1e0] sm:$0xff]  ;;  %v414_v36 = vld [vmem:[#allocation5 + $0x1f0] sm:$0xff] }
  0x6d   : > { %v926_v34 = vpack.c.bf16 %v415_v33, %v413_v32  ;;  %v928_v37 = vpack.c.bf16 %v414_v36, %v412_v35  ;;  %v242_v41 = vld [vmem:[%s1545_s2] sm:$0x3]  ;;  %v560_v32 = vld [vmem:[#allocation5 + $0x208] sm:$0xff]  ;;  %v562_v33 = vld [vmem:[#allocation5 + $0x218] sm:$0xff] }
  0x6e   : > { %889 = vmatpush1.bf16.msra.mxu0 %v888_v38  ;;  %v244_v38 = vlaneseq  ;;  %v559_v35 = vld [vmem:[#allocation5 + $0x200] sm:$0xff]  ;;  %v561_v36 = vld [vmem:[#allocation5 + $0x210] sm:$0xff] }
  0x6f   : > { %891 = vmatprep.subr.bf16.mxu0 %v890_v39  ;;  %909 = vmatpush1.bf16.msra.mxu1 %v908_v7 }
  0x70   : > { %911 = vmatprep.subr.bf16.mxu1 %v910_v10  ;;  %v245_v39 = vshrl.u32 %v244_v38, 7  ;;  %v566_v38 = vld [vmem:[#allocation5 + $0x238] sm:$0xff] }
  0x72   : > { %893 = vmatpush1.bf16.msra.mxu0 %v892_v44  ;;  %v1419_v40 = vsub.s32 0, %v245_v39  ;;  %v1425_v58 = vsub.s32 1, %v245_v39 }
  0x73   : > { %895 = vmatprep.subr.bf16.mxu0 %v894_v45  ;;  %913 = vmatpush1.bf16.msra.mxu1 %v912_v13 }
  0x74   : > { %915 = vmatprep.subr.bf16.mxu1 %v914_v16  ;;  %v247_v42 = vrot.slane %v242_v41, %v1419_v40  ;;  %v251_v1 = vrot.slane %v242_v41, %v1425_v58  ;;  %v563_v41 = vld [vmem:[#allocation5 + $0x220] sm:$0xff] }
  0x76   : > { %897 = vmatpush1.bf16.msra.mxu0 %v896_v48 }
  0x77   : > { %917 = vmatpush1.bf16.msra.mxu1 %v916_v19 }
  0x78   : > { %919 = vmatprep.subr.bf16.mxu1 %v918_v22 }
  0x79   : > { %319 = vmatmul.mubr.f32.vlgmr.msra.gmra.mrb[0].mxu0 %v1400_v49 }
  0x7a   : > { %324 = vmatprep.mubr.f32.mxu0 %v1226_v0 }
  0x7b   : > { %921 = vmatpush1.bf16.msra.mxu1 %v920_v25 }
  0x7c   : > { %923 = vmatprep.subr.bf16.mxu1 %v922_v28 }
  0x7d   : > { %325 = vmatmul.mubr.f32.gmra.mrb[2].mxu0 %v1405_v50 }
  0x7e   : > { %330 = vmatprep.mubr.f32.mxu0 %v1226_v0 }
  0x7f   : > { %925 = vmatpush1.bf16.msra.mxu1 %v924_v31 }
  0x80   : > { %927 = vmatprep.subr.bf16.mxu1 %v926_v34  ;;  %v930_v34 = vpack.c.bf16 %v562_v33, %v560_v32 }
  0x81   : > { %331 = vmatmul.mubr.f32.gmra.mrb[4].mxu0 %v1410_v51 }
  0x82   : > { %336 = vmatprep.mubr.f32.mxu0 %v1226_v0  ;;  %931 = vmatprep.subr.bf16.mxu0 %v930_v34 }
  0x83   : > { %929 = vmatpush1.bf16.msra.mxu1 %v928_v37  ;;  %v564_v37 = vld [vmem:[#allocation5 + $0x228] sm:$0xff] }
  0x84   : > { %962 = vmatprep.subr.bf16.mxu1 %v930_v34  ;;  %v934_v39 = vpack.c.bf16 %v566_v38, %v564_v37 }
  0x85   : > { %337 = vmatmul.mubr.f32.gmra.mrb[6].mxu0 %v1415_v52 }
  0x86   : > { %668 = vmatprep.mubr.f32.mxu0 %v1226_v0 }
 0x14c   : > { %v320_v43 = vpop.f32.mrb[0].mxu0 }
 0x14d   : > { %v321_v44 = vadd.f32 %v320_v43, %v247_v42  ;;  %v322_v45 = vpop.f32.mrb[1].mxu0  ;;  %v568_v43 = vld [vmem:[#allocation5 + $0x248] sm:$0xff] }
 0x14e   : > { %v323_v5 = vadd.f32 %v322_v45, %v251_v1 }
 0x14f   : > { %v845_v46 = vmul.f32 -1.442695, %v321_v44  ;;  %v570_v44 = vld [vmem:[#allocation5 + $0x258] sm:$0xff] }
 0x150   : > { %v326_v47 = vpop.f32.mrb[2].mxu0  ;;  %v367_v8 = vmax.f32 %v323_v5, 0.0  ;;  %v938_v45 = vpack.c.bf16 %v570_v44, %v568_v43 }
 0x151   : > { %1042 = vpow2.f32 %v845_v46  ;;  %v327_v48 = vadd.f32 %v326_v47, %v247_v42  ;;  %v328_v53 = vpop.f32.mrb[3].mxu0  ;;  %v567_v46 = vld [vmem:[#allocation5 + $0x240] sm:$0xff]  ;;  %v569_v47 = vld [vmem:[#allocation5 + $0x250] sm:$0xff] }
 0x152   : > { %v329_v9 = vadd.f32 %v328_v53, %v251_v1  ;;  %v371_v12 = vsub.f32 %v367_v8, %v1400_v49  ;;  %v572_v53 = vld [vmem:[#allocation5 + $0x268] sm:$0xff] }
 0x153   : > { %v846_v54 = vmul.f32 -1.442695, %v327_v48  ;;  %v940_v48 = vpack.c.bf16 %v569_v47, %v567_v46 }
 0x154   : > { %v332_v55 = vpop.f32.mrb[4].mxu0  ;;  %v368_v13 = vmax.f32 %v329_v9, 0.0  ;;  %v584_v9 = vld [vmem:[#allocation5 + $0x2c8] sm:$0xff] }
 0x155   : > { %1044 = vpow2.f32 %v846_v54  ;;  %v333_v56 = vadd.f32 %v332_v55, %v247_v42  ;;  %v334_v57 = vpop.f32.mrb[5].mxu0  ;;  %v574_v54 = vld [vmem:[#allocation5 + $0x278] sm:$0xff] }
 0x156   : > { %v335_v14 = vadd.f32 %v334_v57, %v251_v1  ;;  %v372_v18 = vsub.f32 %v368_v13, %v1405_v50  ;;  %v942_v55 = vpack.c.bf16 %v574_v54, %v572_v53  ;;  %v573_v57 = vld [vmem:[#allocation5 + $0x270] sm:$0xff] }
 0x157   : > { %v847_v59 = vmul.f32 -1.442695, %v333_v56  ;;  %v571_v56 = vld [vmem:[#allocation5 + $0x260] sm:$0xff]  ;;  %v585_v13 = vld [vmem:[#allocation5 + $0x2d0] sm:$0xff] }
 0x158   : > { %v338_v60 = vpop.f32.mrb[6].mxu0  ;;  %v369_v19 = vmax.f32 %v335_v14, 0.0 }
 0x159   : > { %1046 = vpow2.f32 %v847_v59  ;;  %v339_v61 = vadd.f32 %v338_v60, %v247_v42  ;;  %v340_v62 = vpop.f32.mrb[7].mxu0  ;;  %v944_v59 = vpack.c.bf16 %v573_v57, %v571_v56  ;;  %v576_v60 = vld [vmem:[#allocation5 + $0x288] sm:$0xff] }
 0x15a   : > { %v341_v20 = vadd.f32 %v340_v62, %v251_v1  ;;  %v373_v24 = vsub.f32 %v369_v19, %v1410_v51  ;;  %v577_v1 = vld [vmem:[#allocation5 + $0x290] sm:$0xff] }
 0x15b   : > { %v1043_v63 = vpop.eup %1042  ;;  %v848_v2 = vmul.f32 -1.442695, %v339_v61  ;;  %v578_v61 = vld [vmem:[#allocation5 + $0x298] sm:$0xff]  ;;  %v589_v19 = vld [vmem:[#allocation5 + $0x2f0] sm:$0xff] }
 0x15c   : > { %v355_v3 = vadd.f32 1.0, %v1043_v63  ;;  %v370_v25 = vmax.f32 %v341_v20, 0.0  ;;  %v946_v62 = vpack.c.bf16 %v578_v61, %v576_v60  ;;  %v575_v63 = vld [vmem:[#allocation5 + $0x280] sm:$0xff] }
 0x15d   : > { %1048 = vpow2.f32 %v848_v2  ;;  %v948_v2 = vpack.c.bf16 %v577_v1, %v575_v63 }
 0x15e   : > { %1050 = vrcp.f32 %v355_v3  ;;  %v580_v3 = vld [vmem:[#allocation5 + $0x2a8] sm:$0xff] }
 0x15f   : > { %v1045_v4 = vpop.eup %1044 }
 0x160   : > { %v356_v6 = vadd.f32 1.0, %v1045_v4  ;;  %v582_v4 = vld [vmem:[#allocation5 + $0x2b8] sm:$0xff] }
 0x161   : > { %v950_v5 = vpack.c.bf16 %v582_v4, %v580_v3 }
 0x162   : > { %1052 = vrcp.f32 %v356_v6  ;;  %v579_v6 = vld [vmem:[#allocation5 + $0x2a0] sm:$0xff] }
 0x163   : > { %v1047_v7 = vpop.eup %1046 }
 0x164   : > { %v357_v10 = vadd.f32 1.0, %v1047_v7  ;;  %v581_v7 = vld [vmem:[#allocation5 + $0x2b0] sm:$0xff] }
 0x165   : > { %v952_v8 = vpack.c.bf16 %v581_v7, %v579_v6 }
 0x166   : > { %1054 = vrcp.f32 %v357_v10  ;;  %v586_v10 = vld [vmem:[#allocation5 + $0x2d8] sm:$0xff] }
 0x167   : > { %v1049_v11 = vpop.eup %1048 }
 0x168   : > { %v1051_v15 = vpop.eup %1050  ;;  %v358_v16 = vadd.f32 1.0, %v1049_v11  ;;  %v954_v11 = vpack.c.bf16 %v586_v10, %v584_v9 }
 0x169   : > { %v375_v17 = vmul.f32 %v1051_v15, %v371_v12  ;;  %v583_v12 = vld [vmem:[#allocation5 + $0x2c0] sm:$0xff]  ;;  %v588_v15 = vld [vmem:[#allocation5 + $0x2e8] sm:$0xff] }
 0x16a   : > { %1056 = vrcp.f32 %v358_v16  ;;  %v956_v14 = vpack.c.bf16 %v585_v13, %v583_v12  ;;  %v590_v16 = vld [vmem:[#allocation5 + $0x2f8] sm:$0xff] }
 0x16b   : > { %v1431_v21 = vadd.f32 %v375_v17, %v1400_v49  ;;  %v374_v49 = vsub.f32 %v370_v25, %v1415_v52  ;;  %v958_v17 = vpack.c.bf16 %v590_v16, %v588_v15 }
 0x16c   : > { %v1053_v22 = vpop.eup %1052 }
 0x16d   : > { %v376_v23 = vmul.f32 %v1053_v22, %v372_v18  ;;  %494 = vmatmul.mubr.f32.vlgmr.msra.gmra.mrb[0].mxu1 %v1431_v21  ;;  %v587_v18 = vld [vmem:[#allocation5 + $0x2e0] sm:$0xff] }
 0x16e   : > { %499 = vmatprep.mubr.f32.mxu1 %v1226_v0  ;;  %v960_v20 = vpack.c.bf16 %v589_v19, %v587_v18  ;;  %v849_v22 = vld [vmem:[%s1545_s2 + $0x2] sm:$0x3] }
 0x16f   : > { %v1437_v26 = vadd.f32 %v376_v23, %v1405_v50  ;;  %v422_v23 = vrot.slane %v849_v22, %v1419_v40 }
 0x170   : > { %v1055_v27 = vpop.eup %1054 }
 0x171   : > { %v377_v28 = vmul.f32 %v1055_v27, %v373_v24  ;;  %500 = vmatmul.mubr.f32.gmra.mrb[2].mxu1 %v1437_v26 }
 0x172   : > { %505 = vmatprep.mubr.f32.mxu1 %v1226_v0 }
 0x173   : > { %v1443_v29 = vadd.f32 %v377_v28, %v1410_v51  ;;  %v932_v51 = vpack.c.bf16 %v561_v36, %v559_v35 }
 0x174   : > { %v1057_v30 = vpop.eup %1056 }
 0x175   : > { %v378_v31 = vmul.f32 %v1057_v30, %v374_v49  ;;  %506 = vmatmul.mubr.f32.gmra.mrb[4].mxu1 %v1443_v29  ;;  %933 = vmatpush1.bf16.msra.mxu0 %v932_v51 }
 0x176   : > { %511 = vmatprep.mubr.f32.mxu1 %v1226_v0  ;;  %970 = vmatpush1.bf16.msra.mxu1 %v932_v51 }
 0x177   : > { %v1448_v50 = vadd.f32 %v378_v31, %v1415_v52  ;;  %v565_v52 = vld [vmem:[#allocation5 + $0x230] sm:$0xff]  ;;  %935 = vmatprep.subr.bf16.mxu0 %v934_v39  ;;  %963 = vmatprep.subr.bf16.mxu1 %v934_v39 }
 0x178   : > { %v936_v42 = vpack.c.bf16 %v565_v52, %v563_v41  ;;  %v426_v41 = vrot.slane %v849_v22, %v1425_v58 }
 0x179   : > { %512 = vmatmul.mubr.f32.gmra.mrb[6].mxu1 %v1448_v50 }
 0x17a   : > { %680 = vmatprep.mubr.f32.mxu1 %v1226_v0  ;;  %937 = vmatpush1.bf16.msra.mxu0 %v936_v42 }
 0x17b   : > { %971 = vmatpush1.bf16.msra.mxu1 %v936_v42  ;;  %939 = vmatprep.subr.bf16.mxu0 %v938_v45 }
 0x17c   : > { %964 = vmatprep.subr.bf16.mxu1 %v938_v45 }
 0x17e   : > { %941 = vmatpush1.bf16.msra.mxu0 %v940_v48 }
 0x17f   : > { %972 = vmatpush1.bf16.msra.mxu1 %v940_v48  ;;  %943 = vmatprep.subr.bf16.mxu0 %v942_v55 }
 0x180   : > { %965 = vmatprep.subr.bf16.mxu1 %v942_v55 }
 0x182   : > { %945 = vmatpush1.bf16.msra.mxu0 %v944_v59 }
 0x183   : > { %973 = vmatpush1.bf16.msra.mxu1 %v944_v59  ;;  %947 = vmatprep.subr.bf16.mxu0 %v946_v62 }
 0x184   : > { %966 = vmatprep.subr.bf16.mxu1 %v946_v62 }
 0x186   : > { %949 = vmatpush1.bf16.msra.mxu0 %v948_v2 }
 0x187   : > { %974 = vmatpush1.bf16.msra.mxu1 %v948_v2  ;;  %951 = vmatprep.subr.bf16.mxu0 %v950_v5 }
 0x188   : > { %967 = vmatprep.subr.bf16.mxu1 %v950_v5 }
 0x18a   : > { %953 = vmatpush1.bf16.msra.mxu0 %v952_v8 }
 0x18b   : > { %975 = vmatpush1.bf16.msra.mxu1 %v952_v8  ;;  %955 = vmatprep.subr.bf16.mxu0 %v954_v11 }
 0x18c   : > { %968 = vmatprep.subr.bf16.mxu1 %v954_v11 }
 0x18e   : > { %957 = vmatpush1.bf16.msra.mxu0 %v956_v14 }
 0x18f   : > { %976 = vmatpush1.bf16.msra.mxu1 %v956_v14  ;;  %959 = vmatprep.subr.bf16.mxu0 %v958_v17 }
 0x190   : > { %969 = vmatprep.subr.bf16.mxu1 %v958_v17 }
 0x192   : > { %961 = vmatpush1.bf16.msra.mxu0 %v960_v20 }
 0x193   : > { %977 = vmatpush1.bf16.msra.mxu1 %v960_v20 }
 0x240   : > { %v495_v24 = vpop.f32.mrb[0].mxu1 }
 0x241   : > { %v496_v25 = vadd.f32 %v495_v24, %v422_v23  ;;  %v497_v27 = vpop.f32.mrb[1].mxu1 }
 0x242   : > { %v498_v44 = vadd.f32 %v497_v27, %v426_v41 }
 0x243   : > { %v850_v28 = vmul.f32 -1.442695, %v496_v25 }
 0x244   : > { %v501_v49 = vpop.f32.mrb[2].mxu1  ;;  %v542_v47 = vmax.f32 %v498_v44, 0.0 }
 0x245   : > { %1058 = vpow2.f32 %v850_v28  ;;  %v502_v30 = vadd.f32 %v501_v49, %v422_v23  ;;  %v503_v31 = vpop.f32.mrb[3].mxu1 }
 0x246   : > { %v504_v48 = vadd.f32 %v503_v31, %v426_v41  ;;  %v546_v55 = vsub.f32 %v542_v47, %v1431_v21 }
 0x247   : > { %v851_v32 = vmul.f32 -1.442695, %v502_v30 }
 0x248   : > { %v507_v33 = vpop.f32.mrb[4].mxu1  ;;  %v543_v56 = vmax.f32 %v504_v48, 0.0 }
 0x249   : > { %1060 = vpow2.f32 %v851_v32  ;;  %v508_v34 = vadd.f32 %v507_v33, %v422_v23  ;;  %v509_v35 = vpop.f32.mrb[5].mxu1 }
 0x24a   : > { %v510_v57 = vadd.f32 %v509_v35, %v426_v41  ;;  %v547_v63 = vsub.f32 %v543_v56, %v1437_v26 }
 0x24b   : > { %v852_v36 = vmul.f32 -1.442695, %v508_v34 }
 0x24c   : > { %v513_v51 = vpop.f32.mrb[6].mxu1  ;;  %v544_v1 = vmax.f32 %v510_v57, 0.0 }
 0x24d   : > { %1062 = vpow2.f32 %v852_v36  ;;  %v514_v37 = vadd.f32 %v513_v51, %v422_v23  ;;  %v515_v38 = vpop.f32.mrb[7].mxu1 }
 0x24e   : > { %v516_v2 = vadd.f32 %v515_v38, %v426_v41  ;;  %v548_v5 = vsub.f32 %v544_v1, %v1443_v29 }
 0x24f   : > { %v1059_v39 = vpop.eup %1058  ;;  %v853_v52 = vmul.f32 -1.442695, %v514_v37 }
 0x250   : > { %v530_v42 = vadd.f32 1.0, %v1059_v39  ;;  %v545_v6 = vmax.f32 %v516_v2, 0.0 }
 0x251   : > { %1064 = vpow2.f32 %v853_v52 }
 0x252   : > { %1066 = vrcp.f32 %v530_v42  ;;  %v549_v10 = vsub.f32 %v545_v6, %v1448_v50 }
 0x253   : > { %v1061_v43 = vpop.eup %1060 }
 0x254   : > { %v531_v45 = vadd.f32 1.0, %v1061_v43 }
 0x256   : > { %1068 = vrcp.f32 %v531_v45 }
 0x257   : > { %v1063_v46 = vpop.eup %1062 }
 0x258   : > { %v532_v53 = vadd.f32 1.0, %v1063_v46 }
 0x25a   : > { %1070 = vrcp.f32 %v532_v53 }
 0x25b   : > { %v1065_v54 = vpop.eup %1064 }
 0x25c   : > { %v1067_v59 = vpop.eup %1066  ;;  %v533_v60 = vadd.f32 1.0, %v1065_v54 }
 0x25d   : > { %v550_v61 = vmul.f32 %v1067_v59, %v546_v55 }
 0x25e   : > { %1072 = vrcp.f32 %v533_v60 }
 0x25f   : > { %v1459_v62 = vadd.f32 %v550_v61, %v1431_v21 }
 0x260   : > { %v1069_v3 = vpop.eup %1068 }
 0x261   : > { %v551_v4 = vmul.f32 %v1069_v3, %v547_v63  ;;  %669 = vmatmul.mubr.f32.vlgmr.msra.gmra.mrb[8].mxu0 %v1459_v62 }
 0x262   : > { %674 = vmatprep.mubr.f32.mxu0 %v1226_v0 }
 0x263   : > { %v1466_v7 = vadd.f32 %v551_v4, %v1437_v26  ;;  %v854_v26 = vld [vmem:[%s1545_s2 + $0x4] sm:$0x3] }
 0x264   : > { %v1071_v8 = vpop.eup %1070 }
 0x265   : > { %v552_v9 = vmul.f32 %v1071_v8, %v548_v5  ;;  %675 = vmatmul.mubr.f32.gmra.mrb[10].mxu0 %v1466_v7 }
 0x267   : > { %v1470_v21 = vadd.f32 %v552_v9, %v1443_v29  ;;  %v597_v29 = vrot.slane %v854_v26, %v1419_v40  ;;  %v601_v40 = vrot.slane %v854_v26, %v1425_v58 }
 0x268   : > { %v1073_v11 = vpop.eup %1072 }
 0x269   : > { %v553_v12 = vmul.f32 %v1073_v11, %v549_v10  ;;  %681 = vmatmul.mubr.f32.vlgmr.msra.gmra.mrb[8].mxu1 %v1470_v21 }
 0x26a   : > { %686 = vmatprep.mubr.f32.mxu1 %v1226_v0 }
 0x26b   : > { %v1476_v13 = vadd.f32 %v553_v12, %v1448_v50 }
 0x26d   : > { %687 = vmatmul.mubr.f32.gmra.mrb[10].mxu1 %v1476_v13 }
 0x334   : > { %v670_v14 = vpop.f32.mrb[8].mxu0 }
 0x335   : > { %v671_v15 = vadd.f32 %v670_v14, %v597_v29  ;;  %v672_v16 = vpop.f32.mrb[9].mxu0 }
 0x336   : > { %v673_v33 = vadd.f32 %v672_v16, %v601_v40 }
 0x337   : > { %v855_v17 = vmul.f32 -1.442695, %v671_v15 }
 0x338   : > { %v676_v18 = vpop.f32.mrb[10].mxu0  ;;  %v717_v36 = vmax.f32 %v673_v33, 0.0 }
 0x339   : > { %1074 = vpow2.f32 %v855_v17  ;;  %v677_v19 = vadd.f32 %v676_v18, %v597_v29  ;;  %v678_v20 = vpop.f32.mrb[11].mxu0 }
 0x33a   : > { %v679_v51 = vadd.f32 %v678_v20, %v601_v40  ;;  %v721_v39 = vsub.f32 %v717_v36, %v1459_v62 }
 0x33b   : > { %v856_v0 = vmul.f32 -1.442695, %v677_v19 }
 0x33c   : > { %v682_v22 = vpop.f32.mrb[8].mxu1  ;;  %v718_v41 = vmax.f32 %v679_v51, 0.0 }
 0x33d   : > { %1076 = vpow2.f32 %v856_v0  ;;  %v683_v50 = vadd.f32 %v682_v22, %v597_v29  ;;  %v684_v23 = vpop.f32.mrb[9].mxu1 }
 0x33e   : > { %v685_v52 = vadd.f32 %v684_v23, %v601_v40  ;;  %v722_v45 = vsub.f32 %v718_v41, %v1466_v7 }
 0x33f   : > { %v857_v24 = vmul.f32 -1.442695, %v683_v50 }
 0x340   : > { %v688_v25 = vpop.f32.mrb[10].mxu1  ;;  %v719_v46 = vmax.f32 %v685_v52, 0.0 }
 0x341   : > { %1078 = vpow2.f32 %v857_v24  ;;  %v689_v27 = vadd.f32 %v688_v25, %v597_v29  ;;  %v690_v28 = vpop.f32.mrb[11].mxu1 }
 0x342   : > { %v691_v47 = vadd.f32 %v690_v28, %v601_v40  ;;  %v723_v55 = vsub.f32 %v719_v46, %v1470_v21 }
 0x343   : > { %v1075_v49 = vpop.eup %1074  ;;  %v858_v30 = vmul.f32 -1.442695, %v689_v27 }
 0x344   : > { %v705_v31 = vadd.f32 1.0, %v1075_v49  ;;  %v720_v56 = vmax.f32 %v691_v47, 0.0 }
 0x345   : > { %1080 = vpow2.f32 %v858_v30 }
 0x346   : > { %1082 = vrcp.f32 %v705_v31  ;;  %v724_v61 = vsub.f32 %v720_v56, %v1476_v13 }
 0x347   : > { %v1077_v32 = vpop.eup %1076 }
 0x348   : > { %v706_v34 = vadd.f32 1.0, %v1077_v32 }
 0x34a   : > { %1084 = vrcp.f32 %v706_v34 }
 0x34b   : > { %v1079_v35 = vpop.eup %1078 }
 0x34c   : > { %v707_v37 = vadd.f32 1.0, %v1079_v35 }
 0x34e   : > { %1086 = vrcp.f32 %v707_v37 }
 0x34f   : > { %v1081_v38 = vpop.eup %1080 }
 0x350   : > { %v1083_v58 = vpop.eup %1082  ;;  %v708_v42 = vadd.f32 1.0, %v1081_v38 }
 0x351   : > { %v725_v43 = vmul.f32 %v1083_v58, %v721_v39 }
 0x352   : > { %1088 = vrcp.f32 %v708_v42 }
 0x353   : > { %v729_v44 = vadd.f32 %v725_v43, %v1459_v62 }
 0x354   : > { %v1085_v48 = vpop.eup %1084 }
 0x355   : > { %733 = vst [vmem:[%s203_s10] sm:$0xff] %v729_v44  ;;  %v726_v53 = vmul.f32 %v1085_v48, %v722_v45 }
 0x357   : > { %v730_v54 = vadd.f32 %v726_v53, %v1466_v7 }
 0x358   : > { %v1087_v57 = vpop.eup %1086 }
 0x359   : > { %734 = vst [vmem:[%s203_s10 + $0x8] sm:$0xff] %v730_v54  ;;  %v727_v59 = vmul.f32 %v1087_v57, %v723_v55 }
 0x35b   : > { %v731_v60 = vadd.f32 %v727_v59, %v1470_v21 }
 0x35c   : > { %v1089_v62 = vpop.eup %1088 }
 0x35d   : > { %735 = vst [vmem:[%s203_s10 + $0x10] sm:$0xff] %v731_v60  ;;  %v728_v63 = vmul.f32 %v1089_v62, %v724_v61 }
 0x35f   : > { %v732_v1 = vadd.f32 %v728_v63, %v1476_v13 }
 0x361   : > { %736 = vst [vmem:[%s203_s10 + $0x18] sm:$0xff] %v732_v1 }
 0x362   : > { %1161 = shalt.err (!%p1158_p7)
}
 0x363   : > { %s1162_s9 = scalar_lea.hbm %s1499_s23, 512  ;;  %s1166_s4 = scalar_lea.hbm %s1546_s3, 1536 }
 0x364   : > { %p1163_p9 = scmp.ne.s32.totalorder %s1499_s23, %s1162_s9  ;;  %p1167_p5 = scmp.lt.u32.totalorder %s1499_s23, %s1546_s3 }
 0x365   : > { %p1168_p10 = scmp.lt.u32.totalorder %s1166_s4, %s1162_s9  ;;  %p1170_p1 = scmp.lt.u32.totalorder %s1162_s9, %s1499_s23 }
 0x366   : > { %p1164_p11 = pnand %p1163_p9, %p1333_p12 }
 0x367   : > { %p1169_p2 = por %p1168_p10, %p1167_p5 }
 0x368   : > { %p1165_p0 = pneg %p1164_p11 }
 0x369   : > { %p1171_p4 = por %p1170_p1, %p1169_p2 }
 0x36b   : > { %p1172_p6 = pnand %p1171_p4, %p1165_p0 }
 0x36d   : > { %1175 = shalt.err (!%p1172_p6)
}
 0x36e   : > { %s1228_s5 = smov 128   ;;  %s1229_s10 = smov 8  }
 0x36f   : > { %984 = dma.vmem_to_hbm [thread:$0]  (%p1333_p12), %s1494_s11, 512, %s1499_s23, %s738_s30, %s1228_s5, %s1228_s5, %s1229_s10  }
 0x370 PF: > { %p1001_p8 = scmp.ge.s32.totalorder %s1218_s15, 2  ;;  %s766_s27 = sand.u32 1, %s1206_s12  }
 0x371   : > { %p1561_p13 = scmp.ne.s32.totalorder %s1551_s19, 0  ;;  %s767_s28 = scalar_lea.sflag [#allocation4], %s766_s27 }
 0x373   : > { %p995_p3 = pnand %p1001_p8, %p1561_p13 }
 0x375   : > { %1201 = dma.done.wait (!%p995_p3), %s767_s28, 512  }
 0x376   : > { %1203 = vsyncadd (!%p995_p3), %s767_s28, 4294966784  ;;  %p17_p7 = scmp.ge.s32.totalorder %s1303_s24, 5   ;;  %s1562_s12 = smov %s1210_s13 }
 0x377   : > { %s1563_s13 = smov %s1214_s14  ;;  %s1564_s14 = smov %s1329_s17 }
 0x378   : > { %s1565_s15 = smov %s1303_s24  ;;  %19 = sbr.rel (!%p17_p7) target bundleno = 6 (0x6), region = 85 }
 0x37f   :  { %772 = vsyncpa [#allocation3], 1 }
 0x380   :  { %774 = vsyncpa [#allocation3 + $0x1], 1 }
 0x381   :  { %775 = vsyncpa [#allocation6], 1 }
 0x382   :  { %776 = vsyncpa [#allocation4], 1 }
 0x383   :  { %778 = vsyncpa [#allocation4 + $0x1], 1 }

// kernel: tpu_custom_call.1
= control target key start
LH: loop header
LB: loop body
LE: loop exit
PB: predicated region body
PF: predicated region fallthrough
CT: control target
= control target key end

     0   :  { %8 = vsyncpa [#allocation3], 0  ;;  %s1543_s0 = inlined_call_operand.hbm [shape: f32[96,128], index: 0, kind: input, shape index: {}]   ;;  %s1544_s1 = inlined_call_operand.hbm [shape: f32[3,128,256], index: 1, kind: input, shape index: {}]   ;;  %s1545_s2 = inlined_call_operand.vmem [shape: f32[3,1,256], index: 2, kind: input, shape index: {}]   ;;  %s1546_s3 = inlined_call_operand.hbm [shape: f32[96,128], index: 3, kind: output, shape index: {}]  }
   0x1   :  { %10 = vsyncpa [#allocation3 + $0x1], 0 }
   0x2   :  { %11 = vsyncpa [#allocation6], 0 }
   0x3   :  { %12 = vsyncpa [#allocation4], 0 }
   0x4   :  { %14 = vsyncpa [#allocation4 + $0x1], 0  ;;  %s1250_s12 = smov 0   ;;  %s1252_s13 = smov 0  }
   0x5   :  { %s1254_s14 = smov 0   ;;  %s1256_s15 = smov 0  }
   0x6 LB: > { %s1271_s16 = sadd.s32 4294967295, %s1218_s15   ;;  %s834_s17 = sadd.s32 4294967294, %s1218_s15   ;;  %s1218_s15 = sphi %s1256_s15, %s1565_s15   ;;  %s1214_s14 = sphi %s1254_s14, %s1564_s14   ;;  %s1210_s13 = sphi %s1252_s13, %s1563_s13   ;;  %s1206_s12 = sphi %s1250_s12, %s1562_s12  }
   0x7   : > { %p40_p0 = scmp.ne.s32.totalorder %s1210_s13, %s1206_s12  ;;  %p1547_p1 = scmp.eq.s32.totalorder %s1271_s16, 0 }
   0x8   : > { %p112_p3 = scmp.eq.s32.totalorder %s834_s17, 2  ;;  %p835_p5 = scmp.ge.s32.totalorder %s1218_s15, 1 }
   0x9   : > { %p1280_p4 = por %p1547_p1, %p40_p0  ;;  %p119_p7 = scmp.lt.s32.totalorder %s1218_s15, 4 }
   0xa   : > { %p1285_p6 = por %p112_p3, %p40_p0  ;;  %s1220_s21 = smov [#allocation5]  }
   0xb   : > { %s1550_s18 = scalar_select %p1280_p4, 1, 0 }
   0xc   : > { %s1551_s19 = scalar_select %p1285_p6, 1, 0 }
   0xd   : > { %p1290_p8 = pnand %p835_p5, %p119_p7  ;;  %s131_s22 = sshll.u32 %s1220_s21, 4  ;;  %s132_s22 = int_to_ptr.vmem [resolvable:$true] %s131_s22 }
   0xe   : > { %s1303_s24 = sadd.s32 1, %s1218_s15   ;;  %s27_s25 = sadd.s32 1, %s1214_s14 }
   0xf   : > { %s1552_s20 = scalar_select %p1290_p8, 1, 0 }
  0x10   : > { %p986_p9 = pneg %p1290_p8  ;;  %s24_s26 = ssub.s32 %s1218_s15, %s1303_s24 }
  0x11   : > { %s1090_s29 = scalar_lea.hbm %s1544_s1, 12288 }
  0x12   : > { %p1298_p10 = pnand %p986_p9, %p1547_p1  ;;  %p1091_p11 = scmp.ne.s32.totalorder %s1544_s1, %s1090_s29 }
  0x13   : > { %p1097_p3 = scmp.lt.u32.totalorder %s1090_s29, %s1544_s1 }
  0x14   : > { %p1092_p12 = pneg %p1298_p10 }
  0x16   : > { %p1093_p13 = pnand %p1092_p12, %p1091_p11 }
  0x18   : > { %p1094_p0 = pneg %p1093_p13 }
  0x1a   : > { %p1099_p5 = pnand %p1097_p3, %p1094_p0 }
  0x1c   : > { %1102 = shalt.err (!%p1099_p5)
}
  0x1d   : > { %s1103_s7 = scalar_lea.vmem %s132_s22, 12288  ;;  %p1111_p2 = scmp.lt.s32.totalorder %s132_s22, %s132_s22 }
  0x1e   : > { %p1104_p7 = scmp.ne.s32.totalorder %s132_s22, %s1103_s7  ;;  %p1112_p6 = scmp.lt.s32.totalorder %s1103_s7, %s1103_s7 }
  0x20   : > { %p1106_p9 = pnand %p1104_p7, %p1092_p12  ;;  %p1113_p4 = por %p1112_p6, %p1111_p2 }
  0x22   : > { %p1107_p1 = pneg %p1106_p9 }
  0x24   : > { %p1114_p8 = pnand %p1113_p4, %p1107_p1 }
  0x26   : > { %1117 = shalt.err (!%p1114_p8)
}
  0x27   : > { %s1221_s8 = smov 256   ;;  %s1222_s9 = smov 16  }
  0x28   : > { %989 = dma.hbm_to_vmem [thread:$0]  (!%p1298_p10), %s1544_s1, 12288, %s132_s22, [#allocation6], %s1221_s8, %s1221_s8, %s1222_s9  }
  0x29   : > { %p25_p11 = scmp.eq.s32.totalorder %s24_s26, 0  ;;  %p34_p2 = scmp.ne.s32.totalorder %s1214_s14, %s1210_s13 }
  0x2a   : > { %p35_p1 = scmp.eq.s32.totalorder %s1218_s15, 0  ;;  %p999_p4 = scmp.lt.s32.totalorder %s1218_s15, 3 }
  0x2b   : > { %s1329_s17 = scalar_select %p25_p11, %s1214_s14, %s27_s25  }
  0x2c   : > { %p36_p6 = por %p35_p1, %p34_p2  ;;  %p1554_p8 = scmp.eq.s32.totalorder %s1271_s16, 2 }
  0x2d   : > { %s148_s27 = sand.u32 1, %s1214_s14   ;;  %s864_s28 = sshll.u32 %s1218_s15, 9 }
  0x2e   : > { %p1333_p12 = por %p1554_p8, %p34_p2  ;;  %s838_s29 = sshll.u32 %s148_s27, 5 }
  0x2f   : > { %s1342_s4 = scalar_lea.hbm %s1543_s0, %s864_s28  ;;  %s152_s22 = scalar_lea.vmem [#allocation2], %s838_s29 }
  0x30   : > { %s159_s25 = sshll.u32 %s152_s22, 4  ;;  %p1344_p10 = pnand %p999_p4, %p36_p6  ;;  %s1348_s25 = int_to_ptr.vmem [resolvable:$true] %s159_s25 }
  0x31   : > { %s1350_s5 = scalar_lea.sflag [#allocation3], %s148_s27  ;;  %s1118_s6 = scalar_lea.hbm %s1342_s4, 512 }
  0x32   : > { %p1119_p13 = scmp.ne.s32.totalorder %s1342_s4, %s1118_s6  ;;  %p1120_p0 = pneg %p1344_p10 }
  0x33   : > { %s1123_s9 = scalar_lea.hbm %s1543_s0, 1536  ;;  %p1124_p7 = scmp.lt.u32.totalorder %s1342_s4, %s1543_s0 }
  0x34   : > { %p1121_p3 = pnand %p1120_p0, %p1119_p13  ;;  %p1125_p9 = scmp.lt.u32.totalorder %s1123_s9, %s1118_s6 }
  0x35   : > { %p1127_p2 = scmp.lt.u32.totalorder %s1118_s6, %s1342_s4 }
  0x36   : > { %p1122_p5 = pneg %p1121_p3  ;;  %p1126_p11 = por %p1125_p9, %p1124_p7 }
  0x38   : > { %p1128_p1 = por %p1127_p2, %p1126_p11 }
  0x3a   : > { %p1129_p4 = pnand %p1128_p1, %p1122_p5 }
  0x3c   : > { %1132 = shalt.err (!%p1129_p4)
}
  0x3d   : > { %s1133_s27 = scalar_lea.vmem %s1348_s25, 512  ;;  %s1223_s28 = smov [#allocation2]  }
  0x3e   : > { %p1134_p6 = scmp.ne.s32.totalorder %s1348_s25, %s1133_s27  ;;  %s1138_s29 = sshll.u32 %s1223_s28, 4  ;;  %s1139_s29 = int_to_ptr.vmem [resolvable:$false] %s1138_s29 }
  0x3f   : > { %s1140_s23 = scalar_lea.vmem %s1139_s29, 1024  ;;  %p1141_p3 = scmp.lt.s32.totalorder %s1348_s25, %s1139_s29 }
  0x40   : > { %p1136_p8 = pnand %p1134_p6, %p1120_p0  ;;  %p1142_p7 = scmp.lt.s32.totalorder %s1140_s23, %s1133_s27 }
  0x42   : > { %p1137_p13 = pneg %p1136_p8  ;;  %p1143_p9 = por %p1142_p7, %p1141_p3 }
  0x44   : > { %p1144_p11 = pnand %p1143_p9, %p1137_p13 }
  0x46   : > { %1147 = shalt.err (!%p1144_p11)
}
  0x47   : > { %s1224_s30 = smov 128   ;;  %s1225_s22 = smov 8  }
  0x48   : > { %993 = dma.hbm_to_vmem [thread:$0]  (!%p1344_p10), %s1342_s4, 512, %s1348_s25, %s1350_s5, %s1224_s30, %s1224_s30, %s1225_s22  }
  0x49   : > { %p1557_p0 = scmp.ne.s32.totalorder %s1552_s20, 0 }
  0x4a   : > { %s1381_s6 = sand.u32 (!%p1557_p0), 1, %s1210_s13   ;;  %p1558_p5 = scmp.ne.s32.totalorder (!%p1557_p0), %s1550_s18, 0 }
  0x4b   : > { %171 = sbr.rel (%p1557_p0) target bundleno = 880 (0x370), region = 32  ;;  %s842_s7 = sshll.u32 (!%p1557_p0), %s1381_s6, 5 }
  0x4c   : > { %s174_s8 = scalar_lea.sflag (!%p1557_p0), [#allocation3], %s1381_s6  ;;  %s1387_s9 = scalar_lea.vmem (!%p1557_p0), [#allocation2], %s842_s7 }
  0x52   : > { %1193 = dma.done.wait (%p1558_p5), %s174_s8, 512  }
  0x53   : > { %1195 = vsyncadd (%p1558_p5), %s174_s8, 4294966784  ;;  %p1559_p10 = scmp.eq.s32.totalorder %s1271_s16, 0 }
  0x55   : > { %1197 = dma.done.wait (%p1559_p10), [#allocation6], 12288   ;;  %p1560_p2 = pmov %p1559_p10 }
  0x56   : > { %v1226_v0 = vmov 0.0   ;;  %v211_v1 = vld [vmem:[#allocation5 + $0x8] sm:$0xff]  ;;  %v213_v2 = vld [vmem:[#allocation5 + $0x18] sm:$0xff]  ;;  %v210_v3 = vld [vmem:[#allocation5] sm:$0xff]  ;;  %s203_s10 = scalar_lea.vmem [#allocation7], %s842_s7  ;;  %s865_s27 = sshll.u32 %s1271_s16, 9 }
  0x57   : > { %1199 = vsyncadd (%p1560_p2), [#allocation6], 4294955008  ;;  %318 = vmatprep.mubr.f32.mxu0 %v1226_v0  ;;  %493 = vmatprep.mubr.f32.mxu1 %v1226_v0  ;;  %v866_v4 = vpack.c.bf16 %v213_v2, %v211_v1  ;;  %v212_v5 = vld [vmem:[#allocation5 + $0x10] sm:$0xff]  ;;  %v215_v6 = vld [vmem:[#allocation5 + $0x28] sm:$0xff]  ;;  %s751_s11 = sshll.u32 %s203_s10, 4  ;;  %s1499_s23 = scalar_lea.hbm %s1546_s3, %s865_s27  ;;  %s1494_s11 = int_to_ptr.vmem [resolvable:$true] %s751_s11 }
  0x58   : > { %v217_v7 = vld [vmem:[#allocation5 + $0x38] sm:$0xff]  ;;  %v868_v8 = vpack.c.bf16 %v212_v5, %v210_v3  ;;  %v214_v10 = vld [vmem:[#allocation5 + $0x20] sm:$0xff]  ;;  %v216_v11 = vld [vmem:[#allocation5 + $0x30] sm:$0xff]  ;;  %s738_s30 = scalar_lea.sflag [#allocation4], %s1381_s6  ;;  %s1148_s22 = scalar_lea.vmem %s1494_s11, 512 }
  0x59   : > { %v870_v9 = vpack.c.bf16 %v217_v7, %v215_v6  ;;  %v219_v12 = vld [vmem:[#allocation5 + $0x48] sm:$0xff]  ;;  %867 = vmatprep.subr.bf16.mxu0 %v866_v4  ;;  %v221_v13 = vld [vmem:[#allocation5 + $0x58] sm:$0xff]  ;;  %v872_v14 = vpack.c.bf16 %v216_v11, %v214_v10  ;;  %v218_v16 = vld [vmem:[#allocation5 + $0x40] sm:$0xff]  ;;  %p1149_p1 = scmp.ne.s32.totalorder %s1494_s11, %s1148_s22  ;;  %s1227_s16 = smov [#allocation7]  }
  0x5a   : > { %869 = vmatpush1.bf16.msra.mxu0 %v868_v8  ;;  %v874_v15 = vpack.c.bf16 %v221_v13, %v219_v12  ;;  %v220_v17 = vld [vmem:[#allocation5 + $0x50] sm:$0xff]  ;;  %v223_v18 = vld [vmem:[#allocation5 + $0x68] sm:$0xff]  ;;  %v225_v19 = vld [vmem:[#allocation5 + $0x78] sm:$0xff]  ;;  %s1152_s7 = sshll.u32 %s1227_s16, 4  ;;  %s1153_s7 = int_to_ptr.vmem [resolvable:$false] %s1152_s7 }
  0x5b   : > { %871 = vmatprep.subr.bf16.mxu0 %v870_v9  ;;  %v876_v20 = vpack.c.bf16 %v220_v17, %v218_v16  ;;  %v878_v21 = vpack.c.bf16 %v225_v19, %v223_v18  ;;  %v222_v22 = vld [vmem:[#allocation5 + $0x60] sm:$0xff]  ;;  %v224_v23 = vld [vmem:[#allocation5 + $0x70] sm:$0xff]  ;;  %v227_v24 = vld [vmem:[#allocation5 + $0x88] sm:$0xff]  ;;  %p1150_p4 = pnand %p1149_p1, %p1333_p12  ;;  %s1154_s8 = scalar_lea.vmem %s1153_s7, 1024 }
  0x5c   : > { %v229_v25 = vld [vmem:[#allocation5 + $0x98] sm:$0xff]  ;;  %v880_v26 = vpack.c.bf16 %v224_v23, %v222_v22  ;;  %v226_v28 = vld [vmem:[#allocation5 + $0x80] sm:$0xff]  ;;  %v228_v29 = vld [vmem:[#allocation5 + $0x90] sm:$0xff]  ;;  %p1155_p8 = scmp.lt.s32.totalorder %s1494_s11, %s1153_s7  ;;  %p1156_p13 = scmp.lt.s32.totalorder %s1154_s8, %s1148_s22 }
  0x5d   : > { %v882_v27 = vpack.c.bf16 %v229_v25, %v227_v24  ;;  %v231_v30 = vld [vmem:[#allocation5 + $0xa8] sm:$0xff]  ;;  %v233_v31 = vld [vmem:[#allocation5 + $0xb8] sm:$0xff]  ;;  %v884_v32 = vpack.c.bf16 %v228_v29, %v226_v28  ;;  %v230_v34 = vld [vmem:[#allocation5 + $0xa0] sm:$0xff]  ;;  %p1151_p6 = pneg %p1150_p4 }
  0x5e   : > { %873 = vmatpush1.bf16.msra.mxu0 %v872_v14  ;;  %v886_v33 = vpack.c.bf16 %v233_v31, %v231_v30  ;;  %v232_v35 = vld [vmem:[#allocation5 + $0xb0] sm:$0xff]  ;;  %v235_v36 = vld [vmem:[#allocation5 + $0xc8] sm:$0xff]  ;;  %v237_v37 = vld [vmem:[#allocation5 + $0xd8] sm:$0xff]  ;;  %p1157_p3 = por %p1156_p13, %p1155_p8 }
  0x5f   : > { %875 = vmatprep.subr.bf16.mxu0 %v874_v15  ;;  %v888_v38 = vpack.c.bf16 %v232_v35, %v230_v34  ;;  %v890_v39 = vpack.c.bf16 %v237_v37, %v235_v36  ;;  %v234_v40 = vld [vmem:[#allocation5 + $0xc0] sm:$0xff]  ;;  %v236_v41 = vld [vmem:[#allocation5 + $0xd0] sm:$0xff]  ;;  %v239_v42 = vld [vmem:[#allocation5 + $0xe8] sm:$0xff] }
  0x60   : > { %v241_v43 = vld [vmem:[#allocation5 + $0xf8] sm:$0xff]  ;;  %v892_v44 = vpack.c.bf16 %v236_v41, %v234_v40  ;;  %v238_v46 = vld [vmem:[#allocation5 + $0xe0] sm:$0xff]  ;;  %v240_v47 = vld [vmem:[#allocation5 + $0xf0] sm:$0xff]  ;;  %p1158_p7 = pnand %p1157_p3, %p1151_p6 }
  0x61   : > { %v894_v45 = vpack.c.bf16 %v241_v43, %v239_v42  ;;  %v896_v48 = vpack.c.bf16 %v240_v47, %v238_v46  ;;  %v1400_v49 = vld [vmem:[%s1387_s9] sm:$0xff]  ;;  %v1405_v50 = vld [vmem:[%s1387_s9 + $0x8] sm:$0xff]  ;;  %v1410_v51 = vld [vmem:[%s1387_s9 + $0x10] sm:$0xff] }
  0x62   : > { %877 = vmatpush1.bf16.msra.mxu0 %v876_v20  ;;  %v1415_v52 = vld [vmem:[%s1387_s9 + $0x18] sm:$0xff]  ;;  %v385_v53 = vld [vmem:[#allocation5 + $0x108] sm:$0xff]  ;;  %v384_v56 = vld [vmem:[#allocation5 + $0x100] sm:$0xff] }
  0x63   : > { %879 = vmatprep.subr.bf16.mxu0 %v878_v21  ;;  %v387_v54 = vld [vmem:[#allocation5 + $0x118] sm:$0xff]  ;;  %v386_v57 = vld [vmem:[#allocation5 + $0x110] sm:$0xff]  ;;  %v389_v59 = vld [vmem:[#allocation5 + $0x128] sm:$0xff] }
  0x64   : > { %v898_v55 = vpack.c.bf16 %v387_v54, %v385_v53  ;;  %v900_v58 = vpack.c.bf16 %v386_v57, %v384_v56  ;;  %v391_v60 = vld [vmem:[#allocation5 + $0x138] sm:$0xff]  ;;  %v388_v62 = vld [vmem:[#allocation5 + $0x120] sm:$0xff]  ;;  %v390_v63 = vld [vmem:[#allocation5 + $0x130] sm:$0xff] }
  0x65   : > { %v902_v61 = vpack.c.bf16 %v391_v60, %v389_v59  ;;  %v904_v1 = vpack.c.bf16 %v390_v63, %v388_v62  ;;  %v393_v2 = vld [vmem:[#allocation5 + $0x148] sm:$0xff]  ;;  %v395_v3 = vld [vmem:[#allocation5 + $0x158] sm:$0xff]  ;;  %v392_v5 = vld [vmem:[#allocation5 + $0x140] sm:$0xff] }
  0x66   : > { %881 = vmatpush1.bf16.msra.mxu0 %v880_v26  ;;  %899 = vmatprep.subr.bf16.mxu1 %v898_v55  ;;  %v906_v4 = vpack.c.bf16 %v395_v3, %v393_v2  ;;  %v394_v6 = vld [vmem:[#allocation5 + $0x150] sm:$0xff]  ;;  %v397_v8 = vld [vmem:[#allocation5 + $0x168] sm:$0xff]  ;;  %v399_v9 = vld [vmem:[#allocation5 + $0x178] sm:$0xff] }
  0x67   : > { %883 = vmatprep.subr.bf16.mxu0 %v882_v27  ;;  %901 = vmatpush1.bf16.msra.mxu1 %v900_v58  ;;  %v908_v7 = vpack.c.bf16 %v394_v6, %v392_v5  ;;  %v910_v10 = vpack.c.bf16 %v399_v9, %v397_v8  ;;  %v396_v11 = vld [vmem:[#allocation5 + $0x160] sm:$0xff]  ;;  %v398_v12 = vld [vmem:[#allocation5 + $0x170] sm:$0xff]  ;;  %v401_v14 = vld [vmem:[#allocation5 + $0x188] sm:$0xff] }
  0x68   : > { %903 = vmatprep.subr.bf16.mxu1 %v902_v61  ;;  %v912_v13 = vpack.c.bf16 %v398_v12, %v396_v11  ;;  %v403_v15 = vld [vmem:[#allocation5 + $0x198] sm:$0xff]  ;;  %v400_v17 = vld [vmem:[#allocation5 + $0x180] sm:$0xff]  ;;  %v402_v18 = vld [vmem:[#allocation5 + $0x190] sm:$0xff] }
  0x69   : > { %v914_v16 = vpack.c.bf16 %v403_v15, %v401_v14  ;;  %v916_v19 = vpack.c.bf16 %v402_v18, %v400_v17  ;;  %v405_v20 = vld [vmem:[#allocation5 + $0x1a8] sm:$0xff]  ;;  %v407_v21 = vld [vmem:[#allocation5 + $0x1b8] sm:$0xff]  ;;  %v404_v23 = vld [vmem:[#allocation5 + $0x1a0] sm:$0xff] }
  0x6a   : > { %885 = vmatpush1.bf16.msra.mxu0 %v884_v32  ;;  %v918_v22 = vpack.c.bf16 %v407_v21, %v405_v20  ;;  %v406_v24 = vld [vmem:[#allocation5 + $0x1b0] sm:$0xff]  ;;  %v409_v26 = vld [vmem:[#allocation5 + $0x1c8] sm:$0xff]  ;;  %v411_v27 = vld [vmem:[#allocation5 + $0x1d8] sm:$0xff] }
  0x6b   : > { %887 = vmatprep.subr.bf16.mxu0 %v886_v33  ;;  %905 = vmatpush1.bf16.msra.mxu1 %v904_v1  ;;  %v920_v25 = vpack.c.bf16 %v406_v24, %v404_v23  ;;  %v922_v28 = vpack.c.bf16 %v411_v27, %v409_v26  ;;  %v408_v29 = vld [vmem:[#allocation5 + $0x1c0] sm:$0xff]  ;;  %v410_v30 = vld [vmem:[#allocation5 + $0x1d0] sm:$0xff]  ;;  %v413_v32 = vld [vmem:[#allocation5 + $0x1e8] sm:$0xff] }
  0x6c   : > { %907 = vmatprep.subr.bf16.mxu1 %v906_v4  ;;  %v924_v31 = vpack.c.bf16 %v410_v30, %v408_v29  ;;  %v415_v33 = vld [vmem:[#allocation5 + $0x1f8] sm:$0xff]  ;;  %v412_v35 = vld [vmem:[#allocation5 + $0x1e0] sm:$0xff]  ;;  %v414_v36 = vld [vmem:[#allocation5 + $0x1f0] sm:$0xff] }
  0x6d   : > { %v926_v34 = vpack.c.bf16 %v415_v33, %v413_v32  ;;  %v928_v37 = vpack.c.bf16 %v414_v36, %v412_v35  ;;  %v242_v41 = vld [vmem:[%s1545_s2] sm:$0x3]  ;;  %v560_v32 = vld [vmem:[#allocation5 + $0x208] sm:$0xff]  ;;  %v562_v33 = vld [vmem:[#allocation5 + $0x218] sm:$0xff] }
  0x6e   : > { %889 = vmatpush1.bf16.msra.mxu0 %v888_v38  ;;  %v244_v38 = vlaneseq  ;;  %v559_v35 = vld [vmem:[#allocation5 + $0x200] sm:$0xff]  ;;  %v561_v36 = vld [vmem:[#allocation5 + $0x210] sm:$0xff] }
  0x6f   : > { %891 = vmatprep.subr.bf16.mxu0 %v890_v39  ;;  %909 = vmatpush1.bf16.msra.mxu1 %v908_v7 }
  0x70   : > { %911 = vmatprep.subr.bf16.mxu1 %v910_v10  ;;  %v245_v39 = vshrl.u32 %v244_v38, 7  ;;  %v566_v38 = vld [vmem:[#allocation5 + $0x238] sm:$0xff] }
  0x72   : > { %893 = vmatpush1.bf16.msra.mxu0 %v892_v44  ;;  %v1419_v40 = vsub.s32 0, %v245_v39  ;;  %v1425_v58 = vsub.s32 1, %v245_v39 }
  0x73   : > { %895 = vmatprep.subr.bf16.mxu0 %v894_v45  ;;  %913 = vmatpush1.bf16.msra.mxu1 %v912_v13 }
  0x74   : > { %915 = vmatprep.subr.bf16.mxu1 %v914_v16  ;;  %v247_v42 = vrot.slane %v242_v41, %v1419_v40  ;;  %v251_v1 = vrot.slane %v242_v41, %v1425_v58  ;;  %v563_v41 = vld [vmem:[#allocation5 + $0x220] sm:$0xff] }
  0x76   : > { %897 = vmatpush1.bf16.msra.mxu0 %v896_v48 }
  0x77   : > { %917 = vmatpush1.bf16.msra.mxu1 %v916_v19 }
  0x78   : > { %919 = vmatprep.subr.bf16.mxu1 %v918_v22 }
  0x79   : > { %319 = vmatmul.mubr.f32.vlgmr.msra.gmra.mrb[0].mxu0 %v1400_v49 }
  0x7a   : > { %324 = vmatprep.mubr.f32.mxu0 %v1226_v0 }
  0x7b   : > { %921 = vmatpush1.bf16.msra.mxu1 %v920_v25 }
  0x7c   : > { %923 = vmatprep.subr.bf16.mxu1 %v922_v28 }
  0x7d   : > { %325 = vmatmul.mubr.f32.gmra.mrb[2].mxu0 %v1405_v50 }
  0x7e   : > { %330 = vmatprep.mubr.f32.mxu0 %v1226_v0 }
  0x7f   : > { %925 = vmatpush1.bf16.msra.mxu1 %v924_v31 }
  0x80   : > { %927 = vmatprep.subr.bf16.mxu1 %v926_v34  ;;  %v930_v34 = vpack.c.bf16 %v562_v33, %v560_v32 }
  0x81   : > { %331 = vmatmul.mubr.f32.gmra.mrb[4].mxu0 %v1410_v51 }
  0x82   : > { %336 = vmatprep.mubr.f32.mxu0 %v1226_v0  ;;  %931 = vmatprep.subr.bf16.mxu0 %v930_v34 }
  0x83   : > { %929 = vmatpush1.bf16.msra.mxu1 %v928_v37  ;;  %v564_v37 = vld [vmem:[#allocation5 + $0x228] sm:$0xff] }
  0x84   : > { %962 = vmatprep.subr.bf16.mxu1 %v930_v34  ;;  %v934_v39 = vpack.c.bf16 %v566_v38, %v564_v37 }
  0x85   : > { %337 = vmatmul.mubr.f32.gmra.mrb[6].mxu0 %v1415_v52 }
  0x86   : > { %668 = vmatprep.mubr.f32.mxu0 %v1226_v0 }
 0x14c   : > { %v320_v43 = vpop.f32.mrb[0].mxu0 }
 0x14d   : > { %v321_v44 = vadd.f32 %v320_v43, %v247_v42  ;;  %v322_v45 = vpop.f32.mrb[1].mxu0  ;;  %v568_v43 = vld [vmem:[#allocation5 + $0x248] sm:$0xff] }
 0x14e   : > { %v323_v5 = vadd.f32 %v322_v45, %v251_v1 }
 0x14f   : > { %v845_v46 = vmul.f32 -1.442695, %v321_v44  ;;  %v570_v44 = vld [vmem:[#allocation5 + $0x258] sm:$0xff] }
 0x150   : > { %v326_v47 = vpop.f32.mrb[2].mxu0  ;;  %v367_v8 = vmax.f32 %v323_v5, 0.0  ;;  %v938_v45 = vpack.c.bf16 %v570_v44, %v568_v43 }
 0x151   : > { %1042 = vpow2.f32 %v845_v46  ;;  %v327_v48 = vadd.f32 %v326_v47, %v247_v42  ;;  %v328_v53 = vpop.f32.mrb[3].mxu0  ;;  %v567_v46 = vld [vmem:[#allocation5 + $0x240] sm:$0xff]  ;;  %v569_v47 = vld [vmem:[#allocation5 + $0x250] sm:$0xff] }
 0x152   : > { %v329_v9 = vadd.f32 %v328_v53, %v251_v1  ;;  %v371_v12 = vsub.f32 %v367_v8, %v1400_v49  ;;  %v572_v53 = vld [vmem:[#allocation5 + $0x268] sm:$0xff] }
 0x153   : > { %v846_v54 = vmul.f32 -1.442695, %v327_v48  ;;  %v940_v48 = vpack.c.bf16 %v569_v47, %v567_v46 }
 0x154   : > { %v332_v55 = vpop.f32.mrb[4].mxu0  ;;  %v368_v13 = vmax.f32 %v329_v9, 0.0  ;;  %v584_v9 = vld [vmem:[#allocation5 + $0x2c8] sm:$0xff] }
 0x155   : > { %1044 = vpow2.f32 %v846_v54  ;;  %v333_v56 = vadd.f32 %v332_v55, %v247_v42  ;;  %v334_v57 = vpop.f32.mrb[5].mxu0  ;;  %v574_v54 = vld [vmem:[#allocation5 + $0x278] sm:$0xff] }
 0x156   : > { %v335_v14 = vadd.f32 %v334_v57, %v251_v1  ;;  %v372_v18 = vsub.f32 %v368_v13, %v1405_v50  ;;  %v942_v55 = vpack.c.bf16 %v574_v54, %v572_v53  ;;  %v573_v57 = vld [vmem:[#allocation5 + $0x270] sm:$0xff] }
 0x157   : > { %v847_v59 = vmul.f32 -1.442695, %v333_v56  ;;  %v571_v56 = vld [vmem:[#allocation5 + $0x260] sm:$0xff]  ;;  %v585_v13 = vld [vmem:[#allocation5 + $0x2d0] sm:$0xff] }
 0x158   : > { %v338_v60 = vpop.f32.mrb[6].mxu0  ;;  %v369_v19 = vmax.f32 %v335_v14, 0.0 }
 0x159   : > { %1046 = vpow2.f32 %v847_v59  ;;  %v339_v61 = vadd.f32 %v338_v60, %v247_v42  ;;  %v340_v62 = vpop.f32.mrb[7].mxu0  ;;  %v944_v59 = vpack.c.bf16 %v573_v57, %v571_v56  ;;  %v576_v60 = vld [vmem:[#allocation5 + $0x288] sm:$0xff] }
 0x15a   : > { %v341_v20 = vadd.f32 %v340_v62, %v251_v1  ;;  %v373_v24 = vsub.f32 %v369_v19, %v1410_v51  ;;  %v577_v1 = vld [vmem:[#allocation5 + $0x290] sm:$0xff] }
 0x15b   : > { %v1043_v63 = vpop.eup %1042  ;;  %v848_v2 = vmul.f32 -1.442695, %v339_v61  ;;  %v578_v61 = vld [vmem:[#allocation5 + $0x298] sm:$0xff]  ;;  %v589_v19 = vld [vmem:[#allocation5 + $0x2f0] sm:$0xff] }
 0x15c   : > { %v355_v3 = vadd.f32 1.0, %v1043_v63  ;;  %v370_v25 = vmax.f32 %v341_v20, 0.0  ;;  %v946_v62 = vpack.c.bf16 %v578_v61, %v576_v60  ;;  %v575_v63 = vld [vmem:[#allocation5 + $0x280] sm:$0xff] }
 0x15d   : > { %1048 = vpow2.f32 %v848_v2  ;;  %v948_v2 = vpack.c.bf16 %v577_v1, %v575_v63 }
 0x15e   : > { %1050 = vrcp.f32 %v355_v3  ;;  %v580_v3 = vld [vmem:[#allocation5 + $0x2a8] sm:$0xff] }
 0x15f   : > { %v1045_v4 = vpop.eup %1044 }
 0x160   : > { %v356_v6 = vadd.f32 1.0, %v1045_v4  ;;  %v582_v4 = vld [vmem:[#allocation5 + $0x2b8] sm:$0xff] }
 0x161   : > { %v950_v5 = vpack.c.bf16 %v582_v4, %v580_v3 }
 0x162   : > { %1052 = vrcp.f32 %v356_v6  ;;  %v579_v6 = vld [vmem:[#allocation5 + $0x2a0] sm:$0xff] }
 0x163   : > { %v1047_v7 = vpop.eup %1046 }
 0x164   : > { %v357_v10 = vadd.f32 1.0, %v1047_v7  ;;  %v581_v7 = vld [vmem:[#allocation5 + $0x2b0] sm:$0xff] }
 0x165   : > { %v952_v8 = vpack.c.bf16 %v581_v7, %v579_v6 }
 0x166   : > { %1054 = vrcp.f32 %v357_v10  ;;  %v586_v10 = vld [vmem:[#allocation5 + $0x2d8] sm:$0xff] }
 0x167   : > { %v1049_v11 = vpop.eup %1048 }
 0x168   : > { %v1051_v15 = vpop.eup %1050  ;;  %v358_v16 = vadd.f32 1.0, %v1049_v11  ;;  %v954_v11 = vpack.c.bf16 %v586_v10, %v584_v9 }
 0x169   : > { %v375_v17 = vmul.f32 %v1051_v15, %v371_v12  ;;  %v583_v12 = vld [vmem:[#allocation5 + $0x2c0] sm:$0xff]  ;;  %v588_v15 = vld [vmem:[#allocation5 + $0x2e8] sm:$0xff] }
 0x16a   : > { %1056 = vrcp.f32 %v358_v16  ;;  %v956_v14 = vpack.c.bf16 %v585_v13, %v583_v12  ;;  %v590_v16 = vld [vmem:[#allocation5 + $0x2f8] sm:$0xff] }
 0x16b   : > { %v1431_v21 = vadd.f32 %v375_v17, %v1400_v49  ;;  %v374_v49 = vsub.f32 %v370_v25, %v1415_v52  ;;  %v958_v17 = vpack.c.bf16 %v590_v16, %v588_v15 }
 0x16c   : > { %v1053_v22 = vpop.eup %1052 }
 0x16d   : > { %v376_v23 = vmul.f32 %v1053_v22, %v372_v18  ;;  %494 = vmatmul.mubr.f32.vlgmr.msra.gmra.mrb[0].mxu1 %v1431_v21  ;;  %v587_v18 = vld [vmem:[#allocation5 + $0x2e0] sm:$0xff] }
 0x16e   : > { %499 = vmatprep.mubr.f32.mxu1 %v1226_v0  ;;  %v960_v20 = vpack.c.bf16 %v589_v19, %v587_v18  ;;  %v849_v22 = vld [vmem:[%s1545_s2 + $0x2] sm:$0x3] }
 0x16f   : > { %v1437_v26 = vadd.f32 %v376_v23, %v1405_v50  ;;  %v422_v23 = vrot.slane %v849_v22, %v1419_v40 }
 0x170   : > { %v1055_v27 = vpop.eup %1054 }
 0x171   : > { %v377_v28 = vmul.f32 %v1055_v27, %v373_v24  ;;  %500 = vmatmul.mubr.f32.gmra.mrb[2].mxu1 %v1437_v26 }
 0x172   : > { %505 = vmatprep.mubr.f32.mxu1 %v1226_v0 }
 0x173   : > { %v1443_v29 = vadd.f32 %v377_v28, %v1410_v51  ;;  %v932_v51 = vpack.c.bf16 %v561_v36, %v559_v35 }
 0x174   : > { %v1057_v30 = vpop.eup %1056 }
 0x175   : > { %v378_v31 = vmul.f32 %v1057_v30, %v374_v49  ;;  %506 = vmatmul.mubr.f32.gmra.mrb[4].mxu1 %v1443_v29  ;;  %933 = vmatpush1.bf16.msra.mxu0 %v932_v51 }
 0x176   : > { %511 = vmatprep.mubr.f32.mxu1 %v1226_v0  ;;  %970 = vmatpush1.bf16.msra.mxu1 %v932_v51 }
 0x177   : > { %v1448_v50 = vadd.f32 %v378_v31, %v1415_v52  ;;  %v565_v52 = vld [vmem:[#allocation5 + $0x230] sm:$0xff]  ;;  %935 = vmatprep.subr.bf16.mxu0 %v934_v39  ;;  %963 = vmatprep.subr.bf16.mxu1 %v934_v39 }
 0x178   : > { %v936_v42 = vpack.c.bf16 %v565_v52, %v563_v41  ;;  %v426_v41 = vrot.slane %v849_v22, %v1425_v58 }
 0x179   : > { %512 = vmatmul.mubr.f32.gmra.mrb[6].mxu1 %v1448_v50 }
 0x17a   : > { %680 = vmatprep.mubr.f32.mxu1 %v1226_v0  ;;  %937 = vmatpush1.bf16.msra.mxu0 %v936_v42 }
 0x17b   : > { %971 = vmatpush1.bf16.msra.mxu1 %v936_v42  ;;  %939 = vmatprep.subr.bf16.mxu0 %v938_v45 }
 0x17c   : > { %964 = vmatprep.subr.bf16.mxu1 %v938_v45 }
 0x17e   : > { %941 = vmatpush1.bf16.msra.mxu0 %v940_v48 }
 0x17f   : > { %972 = vmatpush1.bf16.msra.mxu1 %v940_v48  ;;  %943 = vmatprep.subr.bf16.mxu0 %v942_v55 }
 0x180   : > { %965 = vmatprep.subr.bf16.mxu1 %v942_v55 }
 0x182   : > { %945 = vmatpush1.bf16.msra.mxu0 %v944_v59 }
 0x183   : > { %973 = vmatpush1.bf16.msra.mxu1 %v944_v59  ;;  %947 = vmatprep.subr.bf16.mxu0 %v946_v62 }
 0x184   : > { %966 = vmatprep.subr.bf16.mxu1 %v946_v62 }
 0x186   : > { %949 = vmatpush1.bf16.msra.mxu0 %v948_v2 }
 0x187   : > { %974 = vmatpush1.bf16.msra.mxu1 %v948_v2  ;;  %951 = vmatprep.subr.bf16.mxu0 %v950_v5 }
 0x188   : > { %967 = vmatprep.subr.bf16.mxu1 %v950_v5 }
 0x18a   : > { %953 = vmatpush1.bf16.msra.mxu0 %v952_v8 }
 0x18b   : > { %975 = vmatpush1.bf16.msra.mxu1 %v952_v8  ;;  %955 = vmatprep.subr.bf16.mxu0 %v954_v11 }
 0x18c   : > { %968 = vmatprep.subr.bf16.mxu1 %v954_v11 }
 0x18e   : > { %957 = vmatpush1.bf16.msra.mxu0 %v956_v14 }
 0x18f   : > { %976 = vmatpush1.bf16.msra.mxu1 %v956_v14  ;;  %959 = vmatprep.subr.bf16.mxu0 %v958_v17 }
 0x190   : > { %969 = vmatprep.subr.bf16.mxu1 %v958_v17 }
 0x192   : > { %961 = vmatpush1.bf16.msra.mxu0 %v960_v20 }
 0x193   : > { %977 = vmatpush1.bf16.msra.mxu1 %v960_v20 }
 0x240   : > { %v495_v24 = vpop.f32.mrb[0].mxu1 }
 0x241   : > { %v496_v25 = vadd.f32 %v495_v24, %v422_v23  ;;  %v497_v27 = vpop.f32.mrb[1].mxu1 }
 0x242   : > { %v498_v44 = vadd.f32 %v497_v27, %v426_v41 }
 0x243   : > { %v850_v28 = vmul.f32 -1.442695, %v496_v25 }
 0x244   : > { %v501_v49 = vpop.f32.mrb[2].mxu1  ;;  %v542_v47 = vmax.f32 %v498_v44, 0.0 }
 0x245   : > { %1058 = vpow2.f32 %v850_v28  ;;  %v502_v30 = vadd.f32 %v501_v49, %v422_v23  ;;  %v503_v31 = vpop.f32.mrb[3].mxu1 }
 0x246   : > { %v504_v48 = vadd.f32 %v503_v31, %v426_v41  ;;  %v546_v55 = vsub.f32 %v542_v47, %v1431_v21 }
 0x247   : > { %v851_v32 = vmul.f32 -1.442695, %v502_v30 }
 0x248   : > { %v507_v33 = vpop.f32.mrb[4].mxu1  ;;  %v543_v56 = vmax.f32 %v504_v48, 0.0 }
 0x249   : > { %1060 = vpow2.f32 %v851_v32  ;;  %v508_v34 = vadd.f32 %v507_v33, %v422_v23  ;;  %v509_v35 = vpop.f32.mrb[5].mxu1 }
 0x24a   : > { %v510_v57 = vadd.f32 %v509_v35, %v426_v41  ;;  %v547_v63 = vsub.f32 %v543_v56, %v1437_v26 }
 0x24b   : > { %v852_v36 = vmul.f32 -1.442695, %v508_v34 }
 0x24c   : > { %v513_v51 = vpop.f32.mrb[6].mxu1  ;;  %v544_v1 = vmax.f32 %v510_v57, 0.0 }
 0x24d   : > { %1062 = vpow2.f32 %v852_v36  ;;  %v514_v37 = vadd.f32 %v513_v51, %v422_v23  ;;  %v515_v38 = vpop.f32.mrb[7].mxu1 }
 0x24e   : > { %v516_v2 = vadd.f32 %v515_v38, %v426_v41  ;;  %v548_v5 = vsub.f32 %v544_v1, %v1443_v29 }
 0x24f   : > { %v1059_v39 = vpop.eup %1058  ;;  %v853_v52 = vmul.f32 -1.442695, %v514_v37 }
 0x250   : > { %v530_v42 = vadd.f32 1.0, %v1059_v39  ;;  %v545_v6 = vmax.f32 %v516_v2, 0.0 }
 0x251   : > { %1064 = vpow2.f32 %v853_v52 }
 0x252   : > { %1066 = vrcp.f32 %v530_v42  ;;  %v549_v10 = vsub.f32 %v545_v6, %v1448_v50 }
 0x253   : > { %v1061_v43 = vpop.eup %1060 }
 0x254   : > { %v531_v45 = vadd.f32 1.0, %v1061_v43 }
 0x256   : > { %1068 = vrcp.f32 %v531_v45 }
 0x257   : > { %v1063_v46 = vpop.eup %1062 }
 0x258   : > { %v532_v53 = vadd.f32 1.0, %v1063_v46 }
 0x25a   : > { %1070 = vrcp.f32 %v532_v53 }
 0x25b   : > { %v1065_v54 = vpop.eup %1064 }
 0x25c   : > { %v1067_v59 = vpop.eup %1066  ;;  %v533_v60 = vadd.f32 1.0, %v1065_v54 }
 0x25d   : > { %v550_v61 = vmul.f32 %v1067_v59, %v546_v55 }
 0x25e   : > { %1072 = vrcp.f32 %v533_v60 }
 0x25f   : > { %v1459_v62 = vadd.f32 %v550_v61, %v1431_v21 }
 0x260   : > { %v1069_v3 = vpop.eup %1068 }
 0x261   : > { %v551_v4 = vmul.f32 %v1069_v3, %v547_v63  ;;  %669 = vmatmul.mubr.f32.vlgmr.msra.gmra.mrb[8].mxu0 %v1459_v62 }
 0x262   : > { %674 = vmatprep.mubr.f32.mxu0 %v1226_v0 }
 0x263   : > { %v1466_v7 = vadd.f32 %v551_v4, %v1437_v26  ;;  %v854_v26 = vld [vmem:[%s1545_s2 + $0x4] sm:$0x3] }
 0x264   : > { %v1071_v8 = vpop.eup %1070 }
 0x265   : > { %v552_v9 = vmul.f32 %v1071_v8, %v548_v5  ;;  %675 = vmatmul.mubr.f32.gmra.mrb[10].mxu0 %v1466_v7 }
 0x267   : > { %v1470_v21 = vadd.f32 %v552_v9, %v1443_v29  ;;  %v597_v29 = vrot.slane %v854_v26, %v1419_v40  ;;  %v601_v40 = vrot.slane %v854_v26, %v1425_v58 }
 0x268   : > { %v1073_v11 = vpop.eup %1072 }
 0x269   : > { %v553_v12 = vmul.f32 %v1073_v11, %v549_v10  ;;  %681 = vmatmul.mubr.f32.vlgmr.msra.gmra.mrb[8].mxu1 %v1470_v21 }
 0x26a   : > { %686 = vmatprep.mubr.f32.mxu1 %v1226_v0 }
 0x26b   : > { %v1476_v13 = vadd.f32 %v553_v12, %v1448_v50 }
 0x26d   : > { %687 = vmatmul.mubr.f32.gmra.mrb[10].mxu1 %v1476_v13 }
 0x334   : > { %v670_v14 = vpop.f32.mrb[8].mxu0 }
 0x335   : > { %v671_v15 = vadd.f32 %v670_v14, %v597_v29  ;;  %v672_v16 = vpop.f32.mrb[9].mxu0 }
 0x336   : > { %v673_v33 = vadd.f32 %v672_v16, %v601_v40 }
 0x337   : > { %v855_v17 = vmul.f32 -1.442695, %v671_v15 }
 0x338   : > { %v676_v18 = vpop.f32.mrb[10].mxu0  ;;  %v717_v36 = vmax.f32 %v673_v33, 0.0 }
 0x339   : > { %1074 = vpow2.f32 %v855_v17  ;;  %v677_v19 = vadd.f32 %v676_v18, %v597_v29  ;;  %v678_v20 = vpop.f32.mrb[11].mxu0 }
 0x33a   : > { %v679_v51 = vadd.f32 %v678_v20, %v601_v40  ;;  %v721_v39 = vsub.f32 %v717_v36, %v1459_v62 }
 0x33b   : > { %v856_v0 = vmul.f32 -1.442695, %v677_v19 }
 0x33c   : > { %v682_v22 = vpop.f32.mrb[8].mxu1  ;;  %v718_v41 = vmax.f32 %v679_v51, 0.0 }
 0x33d   : > { %1076 = vpow2.f32 %v856_v0  ;;  %v683_v50 = vadd.f32 %v682_v22, %v597_v29  ;;  %v684_v23 = vpop.f32.mrb[9].mxu1 }
 0x33e   : > { %v685_v52 = vadd.f32 %v684_v23, %v601_v40  ;;  %v722_v45 = vsub.f32 %v718_v41, %v1466_v7 }
 0x33f   : > { %v857_v24 = vmul.f32 -1.442695, %v683_v50 }
 0x340   : > { %v688_v25 = vpop.f32.mrb[10].mxu1  ;;  %v719_v46 = vmax.f32 %v685_v52, 0.0 }
 0x341   : > { %1078 = vpow2.f32 %v857_v24  ;;  %v689_v27 = vadd.f32 %v688_v25, %v597_v29  ;;  %v690_v28 = vpop.f32.mrb[11].mxu1 }
 0x342   : > { %v691_v47 = vadd.f32 %v690_v28, %v601_v40  ;;  %v723_v55 = vsub.f32 %v719_v46, %v1470_v21 }
 0x343   : > { %v1075_v49 = vpop.eup %1074  ;;  %v858_v30 = vmul.f32 -1.442695, %v689_v27 }
 0x344   : > { %v705_v31 = vadd.f32 1.0, %v1075_v49  ;;  %v720_v56 = vmax.f32 %v691_v47, 0.0 }
 0x345   : > { %1080 = vpow2.f32 %v858_v30 }
 0x346   : > { %1082 = vrcp.f32 %v705_v31  ;;  %v724_v61 = vsub.f32 %v720_v56, %v1476_v13 }
 0x347   : > { %v1077_v32 = vpop.eup %1076 }
 0x348   : > { %v706_v34 = vadd.f32 1.0, %v1077_v32 }
 0x34a   : > { %1084 = vrcp.f32 %v706_v34 }
 0x34b   : > { %v1079_v35 = vpop.eup %1078 }
 0x34c   : > { %v707_v37 = vadd.f32 1.0, %v1079_v35 }
 0x34e   : > { %1086 = vrcp.f32 %v707_v37 }
 0x34f   : > { %v1081_v38 = vpop.eup %1080 }
 0x350   : > { %v1083_v58 = vpop.eup %1082  ;;  %v708_v42 = vadd.f32 1.0, %v1081_v38 }
 0x351   : > { %v725_v43 = vmul.f32 %v1083_v58, %v721_v39 }
 0x352   : > { %1088 = vrcp.f32 %v708_v42 }
 0x353   : > { %v729_v44 = vadd.f32 %v725_v43, %v1459_v62 }
 0x354   : > { %v1085_v48 = vpop.eup %1084 }
 0x355   : > { %733 = vst [vmem:[%s203_s10] sm:$0xff] %v729_v44  ;;  %v726_v53 = vmul.f32 %v1085_v48, %v722_v45 }
 0x357   : > { %v730_v54 = vadd.f32 %v726_v53, %v1466_v7 }
 0x358   : > { %v1087_v57 = vpop.eup %1086 }
 0x359   : > { %734 = vst [vmem:[%s203_s10 + $0x8] sm:$0xff] %v730_v54  ;;  %v727_v59 = vmul.f32 %v1087_v57, %v723_v55 }
 0x35b   : > { %v731_v60 = vadd.f32 %v727_v59, %v1470_v21 }
 0x35c   : > { %v1089_v62 = vpop.eup %1088 }
 0x35d   : > { %735 = vst [vmem:[%s203_s10 + $0x10] sm:$0xff] %v731_v60  ;;  %v728_v63 = vmul.f32 %v1089_v62, %v724_v61 }
 0x35f   : > { %v732_v1 = vadd.f32 %v728_v63, %v1476_v13 }
 0x361   : > { %736 = vst [vmem:[%s203_s10 + $0x18] sm:$0xff] %v732_v1 }
 0x362   : > { %1161 = shalt.err (!%p1158_p7)
}
 0x363   : > { %s1162_s9 = scalar_lea.hbm %s1499_s23, 512  ;;  %s1166_s4 = scalar_lea.hbm %s1546_s3, 1536 }
 0x364   : > { %p1163_p9 = scmp.ne.s32.totalorder %s1499_s23, %s1162_s9  ;;  %p1167_p5 = scmp.lt.u32.totalorder %s1499_s23, %s1546_s3 }
 0x365   : > { %p1168_p10 = scmp.lt.u32.totalorder %s1166_s4, %s1162_s9  ;;  %p1170_p1 = scmp.lt.u32.totalorder %s1162_s9, %s1499_s23 }
 0x366   : > { %p1164_p11 = pnand %p1163_p9, %p1333_p12 }
 0x367   : > { %p1169_p2 = por %p1168_p10, %p1167_p5 }
 0x368   : > { %p1165_p0 = pneg %p1164_p11 }
 0x369   : > { %p1171_p4 = por %p1170_p1, %p1169_p2 }
 0x36b   : > { %p1172_p6 = pnand %p1171_p4, %p1165_p0 }
 0x36d   : > { %1175 = shalt.err (!%p1172_p6)
}
 0x36e   : > { %s1228_s5 = smov 128   ;;  %s1229_s10 = smov 8  }
 0x36f   : > { %984 = dma.vmem_to_hbm [thread:$0]  (%p1333_p12), %s1494_s11, 512, %s1499_s23, %s738_s30, %s1228_s5, %s1228_s5, %s1229_s10  }
 0x370 PF: > { %p1001_p8 = scmp.ge.s32.totalorder %s1218_s15, 2  ;;  %s766_s27 = sand.u32 1, %s1206_s12  }
 0x371   : > { %p1561_p13 = scmp.ne.s32.totalorder %s1551_s19, 0  ;;  %s767_s28 = scalar_lea.sflag [#allocation4], %s766_s27 }
 0x373   : > { %p995_p3 = pnand %p1001_p8, %p1561_p13 }
 0x375   : > { %1201 = dma.done.wait (!%p995_p3), %s767_s28, 512  }
 0x376   : > { %1203 = vsyncadd (!%p995_p3), %s767_s28, 4294966784  ;;  %p17_p7 = scmp.ge.s32.totalorder %s1303_s24, 5   ;;  %s1562_s12 = smov %s1210_s13 }
 0x377   : > { %s1563_s13 = smov %s1214_s14  ;;  %s1564_s14 = smov %s1329_s17 }
 0x378   : > { %s1565_s15 = smov %s1303_s24  ;;  %19 = sbr.rel (!%p17_p7) target bundleno = 6 (0x6), region = 85 }
 0x37f   :  { %772 = vsyncpa [#allocation3], 1 }
 0x380   :  { %774 = vsyncpa [#allocation3 + $0x1], 1 }
 0x381   :  { %775 = vsyncpa [#allocation6], 1 }
 0x382   :  { %776 = vsyncpa [#allocation4], 1 }
 0x383   :  { %778 = vsyncpa [#allocation4 + $0x1], 1 }

</bundles_post_ra>
